<compile_context>
chip_gen: v7x
topology: tpu7x:2x2x1
jax: 0.10.0
libtpu: 0.0.40
codegen_flags: <defaults>
</compile_context>

<pallas_src>
import functools

import jax
import jax.numpy as jnp
from jax.experimental import pallas as pl
from jax.experimental.pallas import tpu as pltpu

BN_EPS = 0.001


# ----------------------------- Pallas kernel ---------------------------------
def _classifier_kernel(x_ref, wpack_ref, bconv_ref, wlin_ref, blin_ref,
                       out_ref, acc_ref):
  bt, hp, wp, c4 = x_ref.shape            # (batch_tile, Ho+1, Wo+1, 4*C_in) bf16
  c = c4 // 4
  ho, wo = hp - 1, wp - 1
  p = ho * wo
  m = bt * p
  oc = bconv_ref.shape[-1]

  def mm(window, w):
    k = w.shape[0]
    return jnp.dot(window.reshape(m, k), w, preferred_element_type=jnp.float32)

  # 3x3 / stride-2 conv as 5 fused matmuls over the space-to-depth input.
  #  A) center 2x2 quad (ky,kx in {1,2}^2): full 4C channel slab, one K=4C matmul.
  acc_ref[...] = mm(x_ref[:, 1:1 + ho, 1:1 + wo, :], wpack_ref[0:4 * c, :])
  #  B) (ky=0, kx in {1,2}): contiguous channel slab [2C:4C], one K=2C matmul.
  acc_ref[...] += mm(x_ref[:, 0:ho, 1:1 + wo, 2 * c:4 * c],
                     wpack_ref[4 * c:6 * c, :])
  #  C) remaining three single taps, K=C each.
  acc_ref[...] += mm(x_ref[:, 0:ho, 0:wo, 3 * c:4 * c],
                     wpack_ref[6 * c:7 * c, :])     # tap (0,0)
  acc_ref[...] += mm(x_ref[:, 1:1 + ho, 0:wo, c:2 * c],
                     wpack_ref[7 * c:8 * c, :])     # tap (1,0)
  acc_ref[...] += mm(x_ref[:, 1:1 + ho, 0:wo, 3 * c:4 * c],
                     wpack_ref[8 * c:9 * c, :])     # tap (2,0)

  # Folded conv-bias + BatchNorm, Dropout2d = identity (inference), ReLU on VPU.
  act = jnp.maximum(acc_ref[...] + bconv_ref[...], 0.0)         # (m, oc) f32

  # Global spatial mean: sum here, the 1/P factor is folded into wlin.
  pooled = jnp.sum(act.reshape(bt, p, oc), axis=1)              # (bt, oc)

  # Linear: bf16 x bf16 -> f32 accumulate, lane-padded to 128 output columns.
  out_ref[0] = (jnp.dot(pooled.astype(jnp.bfloat16), wlin_ref[...],
                        preferred_element_type=jnp.float32) + blin_ref[...])


# ------------------------------ JAX wrapper ----------------------------------
def _space_to_depth_pad(x_nchw):
  """NCHW -> (N, H/2+1, W/2+1, 4*C) layout for the k3/s2/p1 conv."""
  n, c, h, w = x_nchw.shape
  assert h % 2 == 0 and w % 2 == 0, "stride-2 path assumes even spatial dims"
  ho, wo = h // 2, w // 2
  x = jnp.transpose(x_nchw, (0, 2, 3, 1))                       # NHWC
  x = x.reshape(n, ho, 2, wo, 2, c)
  x = jnp.transpose(x, (0, 1, 3, 2, 4, 5))                      # (n, ho, wo, ph, pw, c)
  x = x.reshape(n, ho, wo, 4 * c)
  # One zero block-row/col on top/left == the conv's padding=1 (bottom/right pad
  # rows are never read by a 3x3 stride-2 conv on even-sized inputs).
  x = jnp.pad(x, ((0, 0), (1, 0), (1, 0), (0, 0)))
  return x, ho, wo


@functools.partial(jax.jit, static_argnames=("num_classes",))
def classifier_forward(x_nchw, params, num_classes=14):
  n, c_in, _, _ = x_nchw.shape
  oc = params["conv_w"].shape[0]
  assert c_in % 128 == 0, "lane-aligned channel slicing assumes c_in % 128 == 0"

  # Cast BEFORE the memory-bound space-to-depth relayout (halves its HBM bytes).
  x_s2d, ho, wo = _space_to_depth_pad(x_nchw.astype(jnp.bfloat16))
  p = ho * wo

  # Fold BatchNorm (eval / running stats) into conv weight and bias.
  scale = params["bn_gamma"] * jax.lax.rsqrt(params["bn_var"] + BN_EPS)      # (oc,)
  wconv = params["conv_w"] * scale[:, None, None, None]                       # (oc,ic,3,3)
  bconv = (params["conv_b"] - params["bn_mean"]) * scale + params["bn_beta"]  # (oc,)

  # Per-tap weights (ic, oc), packed along K by fused group:
  #   rows [0:4c]  : center quad (1,1),(1,2),(2,1),(2,2)   (matches (ph,pw) channel order)
  #   rows [4c:6c] : (0,1),(0,2)
  #   rows [6c:9c] : (0,0),(1,0),(2,0)
  taps = jnp.transpose(wconv, (2, 3, 1, 0))                                   # (3,3,ic,oc)
  wpack = jnp.concatenate(
      [taps[1, 1], taps[1, 2], taps[2, 1], taps[2, 2],
       taps[0, 1], taps[0, 2],
       taps[0, 0], taps[1, 0], taps[2, 0]], axis=0).astype(jnp.bfloat16)      # (9*ic, oc)
  bconv = bconv.astype(jnp.float32).reshape(1, oc)

  # Fold the 1/P spatial-mean factor into the linear weight; lane-pad to 128 cols.
  out_cols = 128
  assert num_classes <= out_cols
  wlin = (params["lin_w"].T.astype(jnp.float32)) / float(p)                   # (oc, ncls)
  wlin = jnp.pad(wlin, ((0, 0), (0, out_cols - num_classes))).astype(jnp.bfloat16)
  blin = jnp.pad(params["lin_b"].astype(jnp.float32),
                 (0, out_cols - num_classes)).reshape(1, out_cols)

  # Batch tiling: target ~2048 matmul rows per tile, but keep >= 2 grid tiles when
  # n > 1 so the ("parallel",) axis shards across both TensorCores on v7x.
  bt = max(1, min(n, 2048 // p))
  if n > 1:
    bt = min(bt, -(-n // 2))
  n_tiles = -(-n // bt)
  n_pad = n_tiles * bt
  if n_pad != n:
    x_s2d = jnp.pad(x_s2d, ((0, n_pad - n), (0, 0), (0, 0), (0, 0)))

  hp, wp, c4 = ho + 1, wo + 1, 4 * c_in

  # VMEM budget from actual buffer sizes (v7x has 64 MiB; stay well under).
  est = (2 * bt * hp * wp * c4 * 2                      # activation tile x2 (bf16)
         + bt * p * oc * 4                              # f32 accumulator scratch
         + 9 * c_in * oc * 2 + oc * out_cols * 2 + (oc + out_cols) * 4   # weights
         + 2 * bt * out_cols * 4)                       # output tile x2
  vmem_limit = int(min(32 << 20, max(16 << 20, 2 * est + (8 << 20))))

  out = pl.pallas_call(
      _classifier_kernel,
      out_shape=jax.ShapeDtypeStruct((n_tiles, bt, out_cols), jnp.float32),
      grid=(n_tiles,),
      in_specs=[
          pl.BlockSpec((bt, hp, wp, c4), lambda i: (i, 0, 0, 0)),   # activations
          pl.BlockSpec((9 * c_in, oc), lambda i: (0, 0)),            # packed conv taps
          pl.BlockSpec((1, oc), lambda i: (0, 0)),                   # folded conv bias
          pl.BlockSpec((oc, out_cols), lambda i: (0, 0)),            # linear weight
          pl.BlockSpec((1, out_cols), lambda i: (0, 0)),             # linear bias
      ],
      out_specs=pl.BlockSpec((1, bt, out_cols), lambda i: (i, 0, 0)),
      scratch_shapes=[pltpu.VMEM((bt * p, oc), jnp.float32)],        # f32 conv accumulator
      compiler_params=pltpu.CompilerParams(
          dimension_semantics=("parallel",),
          vmem_limit_bytes=vmem_limit),
  )(x_s2d, wpack, bconv, wlin, blin)

  return out.reshape(n_pad, out_cols)[:n, :num_classes]


# --------------------------- pure-JAX reference ------------------------------
def reference_forward(x_nchw, params):
  conv = jax.lax.conv_general_dilated(
      x_nchw, params["conv_w"], window_strides=(2, 2),
      padding=((1, 1), (1, 1)),
      dimension_numbers=("NCHW", "OIHW", "NCHW"))
  conv = conv + params["conv_b"][None, :, None, None]
  inv_std = 1.0 / jnp.sqrt(params["bn_var"] + BN_EPS)
  bn = (conv - params["bn_mean"][None, :, None, None]) * \
       (inv_std * params["bn_gamma"])[None, :, None, None] + \
       params["bn_beta"][None, :, None, None]
  act = jnp.maximum(bn, 0.0)
  pooled = act.mean(axis=(2, 3))
  return pooled @ params["lin_w"].T + params["lin_b"]


def init_params(key, num_classes=14):
  ks = jax.random.split(key, 8)
  return {
      "conv_w": 0.05 * jax.random.normal(ks[0], (64, 128, 3, 3), jnp.float32),
      "conv_b": 0.05 * jax.random.normal(ks[1], (64,), jnp.float32),
      "bn_gamma": 1.0 + 0.1 * jax.random.normal(ks[2], (64,), jnp.float32),
      "bn_beta": 0.1 * jax.random.normal(ks[3], (64,), jnp.float32),
      "bn_mean": 0.1 * jax.random.normal(ks[4], (64,), jnp.float32),
      "bn_var": 0.5 + jax.random.uniform(ks[5], (64,), jnp.float32),
      "lin_w": 0.05 * jax.random.normal(ks[6], (num_classes, 64), jnp.float32),
      "lin_b": 0.05 * jax.random.normal(ks[7], (num_classes,), jnp.float32),
  }


if __name__ == "__main__":
  key = jax.random.PRNGKey(0)
  k_x, k_p = jax.random.split(key)
  # Small shapes consistent with the module: batch=2, in-channels fixed at 128,
  # spatial 16x16 (conv stride 2 -> 8x8 feature map), 14 classes.
  x = jax.random.normal(k_x, (2, 128, 16, 16), jnp.float32)
  params = init_params(k_p, num_classes=14)

  out = classifier_forward(x, params, num_classes=14)
  out = jax.block_until_ready(out)

  ref = reference_forward(x, params)
  assert out.shape == (2, 14), out.shape
  # bf16 MXU inputs with f32 accumulation: allow a small elementwise tolerance.
  assert jnp.allclose(out, ref, atol=2e-2, rtol=2e-2), "mismatch vs reference"
  print("KERNEL_OK")
</pallas_src>

<mosaic_0001>
module attributes {stable_mosaic.version = 11 : i64} {
  func.func @_classifier_kernel(%arg0: i32, %arg1: memref<1x9x9x512xbf16, #tpu.memory_space<vmem>>, %arg2: memref<1152x64xbf16, #tpu.memory_space<vmem>>, %arg3: memref<1x64xf32, #tpu.memory_space<vmem>>, %arg4: memref<64x128xbf16, #tpu.memory_space<vmem>>, %arg5: memref<1x128xf32, #tpu.memory_space<vmem>>, %arg6: memref<1x1x128xf32, #tpu.memory_space<vmem>>, %arg7: memref<64x64xf32, #tpu.memory_space<vmem>>) attributes {dimension_semantics = [#tpu.dimension_semantics<parallel>], iteration_bounds = array<i64: 2>, scalar_prefetch = 0 : i64, scratch_operands = 1 : i64, tpu.core_type = #tpu.core_type<tc>, window_params = [{transform_indices = @transform_0, window_bounds = array<i64: 1, 9, 9, 512>}, {pipeline_mode = #tpu.pipeline_mode<synchronous>, transform_indices = @transform_1, window_bounds = array<i64: 1152, 64>}, {pipeline_mode = #tpu.pipeline_mode<synchronous>, transform_indices = @transform_2, window_bounds = array<i64: 1, 64>}, {pipeline_mode = #tpu.pipeline_mode<synchronous>, transform_indices = @transform_3, window_bounds = array<i64: 64, 128>}, {pipeline_mode = #tpu.pipeline_mode<synchronous>, transform_indices = @transform_4, window_bounds = array<i64: 1, 128>}, {transform_indices = @transform_5, window_bounds = array<i64: 1, 1, 128>}]} {
    %c0 = arith.constant 0 : index
    %c1 = arith.constant 1 : index
    %c1_0 = arith.constant 1 : index
    %c0_1 = arith.constant 0 : index
    %0 = vector.load %arg1[%c0, %c1, %c1_0, %c0_1] : memref<1x9x9x512xbf16, #tpu.memory_space<vmem>>, vector<1x8x8x512xbf16>
    %c0_2 = arith.constant 0 : index
    %c0_3 = arith.constant 0 : index
    %1 = vector.load %arg2[%c0_2, %c0_3] : memref<1152x64xbf16, #tpu.memory_space<vmem>>, vector<512x64xbf16>
    %2 = vector.shape_cast %0 : vector<1x8x8x512xbf16> to vector<64x512xbf16>
    %cst = arith.constant dense<0.000000e+00> : vector<64x64xf32>
    %3 = tpu.matmul %2, %1, %cst {dimension_numbers = #tpu.dot_dimension_numbers<[1], [0], [0], [1], [0, 0, 1, 1], [], []>} : vector<64x512xbf16>, vector<512x64xbf16>, vector<64x64xf32> -> vector<64x64xf32>
    %c0_4 = arith.constant 0 : index
    %c0_5 = arith.constant 0 : index
    %4 = vector.load %arg7[%c0_4, %c0_5] : memref<64x64xf32, #tpu.memory_space<vmem>>, vector<64x64xf32>
    tpu.vector_store %arg7[%c0_4, %c0_5], %3 {strides = array<i32>} : memref<64x64xf32, #tpu.memory_space<vmem>>, vector<64x64xf32>,
    %c0_6 = arith.constant 0 : index
    %c0_7 = arith.constant 0 : index
    %5 = vector.load %arg7[%c0_6, %c0_7] : memref<64x64xf32, #tpu.memory_space<vmem>>, vector<64x64xf32>
    %c0_8 = arith.constant 0 : index
    %c0_9 = arith.constant 0 : index
    %c1_10 = arith.constant 1 : index
    %c256 = arith.constant 256 : index
    %6 = vector.load %arg1[%c0_8, %c0_9, %c1_10, %c256] : memref<1x9x9x512xbf16, #tpu.memory_space<vmem>>, vector<1x8x8x256xbf16>
    %c512 = arith.constant 512 : index
    %c0_11 = arith.constant 0 : index
    %7 = vector.load %arg2[%c512, %c0_11] : memref<1152x64xbf16, #tpu.memory_space<vmem>>, vector<256x64xbf16>
    %8 = vector.shape_cast %6 : vector<1x8x8x256xbf16> to vector<64x256xbf16>
    %cst_12 = arith.constant dense<0.000000e+00> : vector<64x64xf32>
    %9 = tpu.matmul %8, %7, %cst_12 {dimension_numbers = #tpu.dot_dimension_numbers<[1], [0], [0], [1], [0, 0, 1, 1], [], []>} : vector<64x256xbf16>, vector<256x64xbf16>, vector<64x64xf32> -> vector<64x64xf32>
    %10 = arith.addf %5, %9 : vector<64x64xf32>
    %c0_13 = arith.constant 0 : index
    %c0_14 = arith.constant 0 : index
    %11 = vector.load %arg7[%c0_13, %c0_14] : memref<64x64xf32, #tpu.memory_space<vmem>>, vector<64x64xf32>
    tpu.vector_store %arg7[%c0_13, %c0_14], %10 {strides = array<i32>} : memref<64x64xf32, #tpu.memory_space<vmem>>, vector<64x64xf32>,
    %c0_15 = arith.constant 0 : index
    %c0_16 = arith.constant 0 : index
    %12 = vector.load %arg7[%c0_15, %c0_16] : memref<64x64xf32, #tpu.memory_space<vmem>>, vector<64x64xf32>
    %c0_17 = arith.constant 0 : index
    %c0_18 = arith.constant 0 : index
    %c0_19 = arith.constant 0 : index
    %c384 = arith.constant 384 : index
    %13 = vector.load %arg1[%c0_17, %c0_18, %c0_19, %c384] : memref<1x9x9x512xbf16, #tpu.memory_space<vmem>>, vector<1x8x8x128xbf16>
    %c768 = arith.constant 768 : index
    %c0_20 = arith.constant 0 : index
    %14 = vector.load %arg2[%c768, %c0_20] : memref<1152x64xbf16, #tpu.memory_space<vmem>>, vector<128x64xbf16>
    %15 = vector.shape_cast %13 : vector<1x8x8x128xbf16> to vector<64x128xbf16>
    %cst_21 = arith.constant dense<0.000000e+00> : vector<64x64xf32>
    %16 = tpu.matmul %15, %14, %cst_21 {dimension_numbers = #tpu.dot_dimension_numbers<[1], [0], [0], [1], [0, 0, 1, 1], [], []>} : vector<64x128xbf16>, vector<128x64xbf16>, vector<64x64xf32> -> vector<64x64xf32>
    %17 = arith.addf %12, %16 : vector<64x64xf32>
    %c0_22 = arith.constant 0 : index
    %c0_23 = arith.constant 0 : index
    %18 = vector.load %arg7[%c0_22, %c0_23] : memref<64x64xf32, #tpu.memory_space<vmem>>, vector<64x64xf32>
    tpu.vector_store %arg7[%c0_22, %c0_23], %17 {strides = array<i32>} : memref<64x64xf32, #tpu.memory_space<vmem>>, vector<64x64xf32>,
    %c0_24 = arith.constant 0 : index
    %c0_25 = arith.constant 0 : index
    %19 = vector.load %arg7[%c0_24, %c0_25] : memref<64x64xf32, #tpu.memory_space<vmem>>, vector<64x64xf32>
    %c0_26 = arith.constant 0 : index
    %c1_27 = arith.constant 1 : index
    %c0_28 = arith.constant 0 : index
    %c128 = arith.constant 128 : index
    %20 = vector.load %arg1[%c0_26, %c1_27, %c0_28, %c128] : memref<1x9x9x512xbf16, #tpu.memory_space<vmem>>, vector<1x8x8x128xbf16>
    %c896 = arith.constant 896 : index
    %c0_29 = arith.constant 0 : index
    %21 = vector.load %arg2[%c896, %c0_29] : memref<1152x64xbf16, #tpu.memory_space<vmem>>, vector<128x64xbf16>
    %22 = vector.shape_cast %20 : vector<1x8x8x128xbf16> to vector<64x128xbf16>
    %cst_30 = arith.constant dense<0.000000e+00> : vector<64x64xf32>
    %23 = tpu.matmul %22, %21, %cst_30 {dimension_numbers = #tpu.dot_dimension_numbers<[1], [0], [0], [1], [0, 0, 1, 1], [], []>} : vector<64x128xbf16>, vector<128x64xbf16>, vector<64x64xf32> -> vector<64x64xf32>
    %24 = arith.addf %19, %23 : vector<64x64xf32>
    %c0_31 = arith.constant 0 : index
    %c0_32 = arith.constant 0 : index
    %25 = vector.load %arg7[%c0_31, %c0_32] : memref<64x64xf32, #tpu.memory_space<vmem>>, vector<64x64xf32>
    tpu.vector_store %arg7[%c0_31, %c0_32], %24 {strides = array<i32>} : memref<64x64xf32, #tpu.memory_space<vmem>>, vector<64x64xf32>,
    %c0_33 = arith.constant 0 : index
    %c0_34 = arith.constant 0 : index
    %26 = vector.load %arg7[%c0_33, %c0_34] : memref<64x64xf32, #tpu.memory_space<vmem>>, vector<64x64xf32>
    %c0_35 = arith.constant 0 : index
    %c1_36 = arith.constant 1 : index
    %c0_37 = arith.constant 0 : index
    %c384_38 = arith.constant 384 : index
    %27 = vector.load %arg1[%c0_35, %c1_36, %c0_37, %c384_38] : memref<1x9x9x512xbf16, #tpu.memory_space<vmem>>, vector<1x8x8x128xbf16>
    %c1024 = arith.constant 1024 : index
    %c0_39 = arith.constant 0 : index
    %28 = vector.load %arg2[%c1024, %c0_39] : memref<1152x64xbf16, #tpu.memory_space<vmem>>, vector<128x64xbf16>
    %29 = vector.shape_cast %27 : vector<1x8x8x128xbf16> to vector<64x128xbf16>
    %cst_40 = arith.constant dense<0.000000e+00> : vector<64x64xf32>
    %30 = tpu.matmul %29, %28, %cst_40 {dimension_numbers = #tpu.dot_dimension_numbers<[1], [0], [0], [1], [0, 0, 1, 1], [], []>} : vector<64x128xbf16>, vector<128x64xbf16>, vector<64x64xf32> -> vector<64x64xf32>
    %31 = arith.addf %26, %30 : vector<64x64xf32>
    %c0_41 = arith.constant 0 : index
    %c0_42 = arith.constant 0 : index
    %32 = vector.load %arg7[%c0_41, %c0_42] : memref<64x64xf32, #tpu.memory_space<vmem>>, vector<64x64xf32>
    tpu.vector_store %arg7[%c0_41, %c0_42], %31 {strides = array<i32>} : memref<64x64xf32, #tpu.memory_space<vmem>>, vector<64x64xf32>,
    %c0_43 = arith.constant 0 : index
    %c0_44 = arith.constant 0 : index
    %33 = vector.load %arg7[%c0_43, %c0_44] : memref<64x64xf32, #tpu.memory_space<vmem>>, vector<64x64xf32>
    %c0_45 = arith.constant 0 : index
    %c0_46 = arith.constant 0 : index
    %34 = vector.load %arg3[%c0_45, %c0_46] : memref<1x64xf32, #tpu.memory_space<vmem>>, vector<1x64xf32>
    %35 = vector.broadcast %34 : vector<1x64xf32> to vector<64x64xf32>
    %36 = arith.addf %33, %35 : vector<64x64xf32>
    %cst_47 = arith.constant 0.000000e+00 : f32
    %37 = vector.broadcast %cst_47 : f32 to vector<64x64xf32>
    %38 = arith.maximumf %36, %37 : vector<64x64xf32>
    %39 = vector.shape_cast %38 : vector<64x64xf32> to vector<1x64x64xf32>
    %cst_48 = arith.constant dense<0.000000e+00> : vector<1x64xf32>
    %40 = vector.multi_reduction <add>, %39, %cst_48 [1] : vector<1x64x64xf32> to vector<1x64xf32>
    %41 = arith.truncf %40 : vector<1x64xf32> to vector<1x64xbf16>
    %c0_49 = arith.constant 0 : index
    %c0_50 = arith.constant 0 : index
    %42 = vector.load %arg4[%c0_49, %c0_50] : memref<64x128xbf16, #tpu.memory_space<vmem>>, vector<64x128xbf16>
    %cst_51 = arith.constant dense<0.000000e+00> : vector<1x128xf32>
    %43 = tpu.matmul %41, %42, %cst_51 {dimension_numbers = #tpu.dot_dimension_numbers<[1], [0], [0], [1], [0, 0, 1, 1], [], []>} : vector<1x64xbf16>, vector<64x128xbf16>, vector<1x128xf32> -> vector<1x128xf32>
    %c0_52 = arith.constant 0 : index
    %c0_53 = arith.constant 0 : index
    %44 = vector.load %arg5[%c0_52, %c0_53] : memref<1x128xf32, #tpu.memory_space<vmem>>, vector<1x128xf32>
    %45 = arith.addf %43, %44 : vector<1x128xf32>
    %c0_54 = arith.constant 0 : index
    %c0_55 = arith.constant 0 : index
    %c0_56 = arith.constant 0 : index
    %46 = vector.load %arg6[%c0_54, %c0_55, %c0_56] : memref<1x1x128xf32, #tpu.memory_space<vmem>>, vector<1x1x128xf32>
    %47 = vector.shape_cast %46 : vector<1x1x128xf32> to vector<1x128xf32>
    %48 = vector.shape_cast %45 : vector<1x128xf32> to vector<1x1x128xf32>
    tpu.vector_store %arg6[%c0_54, %c0_55, %c0_56], %48 {strides = array<i32>} : memref<1x1x128xf32, #tpu.memory_space<vmem>>, vector<1x1x128xf32>,
    return
  }
  func.func @transform_0(%arg0: i32) -> (i32, i32, i32, i32) {
    %c0_i32 = arith.constant 0 : i32
    %c0_i32_0 = arith.constant 0 : i32
    %c0_i32_1 = arith.constant 0 : i32
    %c0_i32_2 = arith.constant 0 : i32
    return %arg0, %c0_i32, %c0_i32_0, %c0_i32_1 : i32, i32, i32, i32
  }
  func.func @transform_1(%arg0: i32) -> (i32, i32) {
    %c0_i32 = arith.constant 0 : i32
    %c0_i32_0 = arith.constant 0 : i32
    %c0_i32_1 = arith.constant 0 : i32
    return %c0_i32, %c0_i32_0 : i32, i32
  }
  func.func @transform_2(%arg0: i32) -> (i32, i32) {
    %c0_i32 = arith.constant 0 : i32
    %c0_i32_0 = arith.constant 0 : i32
    %c0_i32_1 = arith.constant 0 : i32
    return %c0_i32, %c0_i32_0 : i32, i32
  }
  func.func @transform_3(%arg0: i32) -> (i32, i32) {
    %c0_i32 = arith.constant 0 : i32
    %c0_i32_0 = arith.constant 0 : i32
    %c0_i32_1 = arith.constant 0 : i32
    return %c0_i32, %c0_i32_0 : i32, i32
  }
  func.func @transform_4(%arg0: i32) -> (i32, i32) {
    %c0_i32 = arith.constant 0 : i32
    %c0_i32_0 = arith.constant 0 : i32
    %c0_i32_1 = arith.constant 0 : i32
    return %c0_i32, %c0_i32_0 : i32, i32
  }
  func.func @transform_5(%arg0: i32) -> (i32, i32, i32) {
    %c0_i32 = arith.constant 0 : i32
    %c0_i32_0 = arith.constant 0 : i32
    %c0_i32_1 = arith.constant 0 : i32
    return %arg0, %c0_i32, %c0_i32_0 : i32, i32, i32
  }
}

</mosaic_0001>

<bundles_post_ra>
// kernel: classifier_forward.1
= control target key start
LH: loop header
LB: loop body
LE: loop exit
PB: predicated region body
PF: predicated region fallthrough
CT: control target
= control target key end

     0   :  { %10 = vsyncpa [#allocation4], 0  ;;  %s3240_s0 = inlined_call_operand.vmem [shape: bf16[2,9,9,512], index: 0, kind: input, shape index: {}]   ;;  %s3241_s1 = inlined_call_operand.vmem [shape: bf16[1152,64], index: 1, kind: input, shape index: {}]   ;;  %s3242_s2 = inlined_call_operand.vmem [shape: f32[1,64], index: 2, kind: input, shape index: {}]   ;;  %s3243_s3 = inlined_call_operand.vmem [shape: bf16[64,128], index: 3, kind: input, shape index: {}]   ;;  %s3244_s4 = inlined_call_operand.vmem [shape: f32[1,128], index: 4, kind: input, shape index: {}]   ;;  %s3245_s5 = inlined_call_operand.hbm [shape: f32[2,1,128], index: 5, kind: output, shape index: {}]  }
   0x1   :  { %12 = vsyncpa [#allocation4 + $0x1], 0  ;;  %s2702_s18 = smov 0   ;;  %s2704_s19 = smov 0  }
   0x2   :  { %s2706_s20 = smov 0   ;;  %s2708_s21 = smov 0  }
   0x3 LB: > { %s2723_s22 = sadd.s32 4294967295, %s2667_s21   ;;  %s2072_s23 = sadd.s32 4294967294, %s2667_s21   ;;  %s2667_s21 = sphi %s2708_s21, %s3253_s21   ;;  %s2663_s20 = sphi %s2706_s20, %s3252_s20   ;;  %s2659_s19 = sphi %s2704_s19, %s3251_s19   ;;  %s2655_s18 = sphi %s2702_s18, %s3250_s18  }
   0x4   : > { %s2727_s24 = sadd.s32 1, %s2667_s21   ;;  %s135_s25 = sadd.s32 1, %s2663_s20 }
   0x5   : > { %s132_s26 = ssub.s32 %s2667_s21, %s2727_s24  ;;  %p145_p0 = scmp.ne.s32.totalorder %s2663_s20, %s2659_s19 }
   0x6   : > { %p133_p1 = scmp.eq.s32.totalorder %s132_s26, 0  ;;  %p146_p2 = scmp.eq.s32.totalorder %s2723_s22, 1 }
   0x7   : > { %p151_p3 = scmp.ne.s32.totalorder %s2659_s19, %s2655_s18  ;;  %p152_p4 = scmp.eq.s32.totalorder %s2072_s23, 1 }
   0x8   : > { %s2738_s27 = scalar_select %p133_p1, %s2663_s20, %s135_s25  }
   0x9   : > { %p2740_p5 = por %p146_p2, %p145_p0  ;;  %p2744_p6 = por %p152_p4, %p151_p3 }
   0xa   : > { %p2075_p7 = scmp.ge.s32.totalorder %s2667_s21, 1  ;;  %p190_p8 = scmp.lt.s32.totalorder %s2667_s21, 3 }
   0xc   : > { %p191_p9 = pnand %p2075_p7, %p190_p8 }
   0xd   : > { %v2529_v0 = vld [vmem:[%s3241_s1 + $0x40] sm:$0xff] (!%p191_p9)   ;;  %v2533_v4 = vld [vmem:[%s3241_s1 + $0x48] sm:$0xff] (!%p191_p9)   ;;  %v2537_v8 = vld [vmem:[%s3241_s1 + $0x50] sm:$0xff] (!%p191_p9)   ;;  %p217_p10 = scmp.lt.s32.totalorder (!%p191_p9), %s2723_s22, 1  ;;  %vm320_vm0 = vsmask.f32 (!%p191_p9), 3328 }
   0xe   : > { %194 = sbr.rel (%p191_p9) target bundleno = 611 (0x263), region = 40  ;;  %v2530_v1 = vld [vmem:[%s3241_s1 + $0xc0] sm:$0xff] (!%p191_p9)   ;;  %2242 = vmatprep.subr.bf16.mxu0 (!%p191_p9), %v2529_v0  ;;  %v2534_v5 = vld [vmem:[%s3241_s1 + $0xc8] sm:$0xff] (!%p191_p9)   ;;  %v2538_v9 = vld [vmem:[%s3241_s1 + $0xd0] sm:$0xff] (!%p191_p9)   ;;  %vm321_vm1 = vsmask.f32 (!%p191_p9), 7440 }
   0xf   : > { %v2531_v2 = vld [vmem:[%s3241_s1] sm:$0xff] (!%p191_p9)   ;;  %2282 = vmatprep.subr.bf16.mxu1 (!%p191_p9), %v2530_v1  ;;  %v2535_v6 = vld [vmem:[%s3241_s1 + $0x8] sm:$0xff] (!%p191_p9)   ;;  %v2539_v10 = vld [vmem:[%s3241_s1 + $0x10] sm:$0xff] (!%p191_p9)   ;;  %vm2670_vm3 = vmmov (!%p191_p9), 0   ;;  %vm933_vm4 = vcmask (!%p191_p9), 523264   ;;  %s215_s9 = sand.u32 (!%p191_p9), 1, %s2659_s19  }
  0x10   : > { %v2532_v3 = vld [vmem:[%s3241_s1 + $0x80] sm:$0xff] (!%p191_p9)   ;;  %2243 = vmatpush3.bf16.msra.mxu0 (!%p191_p9), %v2531_v2  ;;  %v2536_v7 = vld [vmem:[%s3241_s1 + $0x88] sm:$0xff] (!%p191_p9)   ;;  %v2540_v11 = vld [vmem:[%s3241_s1 + $0x90] sm:$0xff] (!%p191_p9)   ;;  %s2239_s12 = sshll.u32 (!%p191_p9), %s2723_s22, 4  ;;  %s216_s13 = scalar_lea.vmem (!%p191_p9), [#allocation3], %s215_s9 }
  0x11   : > { %2283 = vmatpush3.bf16.msra.mxu1 (!%p191_p9), %v2532_v3  ;;  %2244 = vmatprep.subr.bf16.mxu0 (!%p191_p9), %v2533_v4  ;;  %v2541_v12 = vld [vmem:[%s3241_s1 + $0x58] sm:$0xff] (!%p191_p9)   ;;  %v2545_v16 = vld [vmem:[%s3241_s1 + $0x60] sm:$0xff] (!%p191_p9)   ;;  %v2549_v20 = vld [vmem:[%s3241_s1 + $0x68] sm:$0xff] (!%p191_p9)   ;;  %s2017_s14 = sshll.u32 (!%p191_p9), %s216_s13, 4  ;;  %s3198_s23 = scalar_lea.hbm (!%p191_p9), %s3245_s5, %s2239_s12  ;;  %s3200_s14 = int_to_ptr.vmem [resolvable:$true] %s2017_s14 }
  0x12   : > { %2284 = vmatprep.subr.bf16.mxu1 (!%p191_p9), %v2534_v5  ;;  %v2542_v13 = vld [vmem:[%s3241_s1 + $0xd8] sm:$0xff] (!%p191_p9)   ;;  %v2546_v17 = vld [vmem:[%s3241_s1 + $0xe0] sm:$0xff] (!%p191_p9)   ;;  %v2550_v21 = vld [vmem:[%s3241_s1 + $0xe8] sm:$0xff] (!%p191_p9)   ;;  %s2005_s25 = scalar_lea.sflag (!%p191_p9), [#allocation4], %s215_s9 }
  0x13   : > { %v2543_v14 = vld [vmem:[%s3241_s1 + $0x18] sm:$0xff] (!%p191_p9)   ;;  %v2547_v18 = vld [vmem:[%s3241_s1 + $0x20] sm:$0xff] (!%p191_p9)   ;;  %v2551_v22 = vld [vmem:[%s3241_s1 + $0x28] sm:$0xff] (!%p191_p9)  }
  0x14   : > { %2245 = vmatpush3.bf16.msra.mxu0 (!%p191_p9), %v2535_v6  ;;  %v2544_v15 = vld [vmem:[%s3241_s1 + $0x98] sm:$0xff] (!%p191_p9)   ;;  %v2548_v19 = vld [vmem:[%s3241_s1 + $0xa0] sm:$0xff] (!%p191_p9)   ;;  %v2552_v23 = vld [vmem:[%s3241_s1 + $0xa8] sm:$0xff] (!%p191_p9)  }
  0x15   : > { %2285 = vmatpush3.bf16.msra.mxu1 %v2536_v7  ;;  %2246 = vmatprep.subr.bf16.mxu0 %v2537_v8  ;;  %s218_s17 = scalar_select %p217_p10, %s2723_s22, 1  ;;  %v2553_v24 = vld [vmem:[%s3241_s1 + $0x70] sm:$0xff]   ;;  %v2557_v28 = vld [vmem:[%s3241_s1 + $0x78] sm:$0xff]   ;;  %v2561_v56 = vld [vmem:[%s3241_s1 + $0x140] sm:$0xff]  }
  0x16   : > { %2286 = vmatprep.subr.bf16.mxu1 %v2538_v9  ;;  %v2554_v25 = vld [vmem:[%s3241_s1 + $0xf0] sm:$0xff]   ;;  %v2558_v29 = vld [vmem:[%s3241_s1 + $0xf8] sm:$0xff]   ;;  %vm2866_vm2 = vmor %vm320_vm0, %vm321_vm1  ;;  %s2605_s22 = scalar_lea.vmem %s3200_s14, 16 }
  0x17   : > { %s2487_s10 = smul.u32 288, %s218_s17  ;;  %v2555_v26 = vld [vmem:[%s3241_s1 + $0x30] sm:$0xff]   ;;  %v2559_v30 = vld [vmem:[%s3241_s1 + $0x38] sm:$0xff]   ;;  %p2606_p11 = scmp.ne.s32.totalorder %s3200_s14, %s2605_s22 }
  0x18   : > { %2247 = vmatpush3.bf16.msra.mxu0 %v2539_v10  ;;  %v2556_v27 = vld [vmem:[%s3241_s1 + $0xb0] sm:$0xff]   ;;  %v2560_v31 = vld [vmem:[%s3241_s1 + $0xb8] sm:$0xff]   ;;  %v2562_v10 = vld [vmem:[%s3241_s1 + $0x100] sm:$0xff]  }
  0x19   : > { %2287 = vmatpush3.bf16.msra.mxu1 %v2540_v11  ;;  %2248 = vmatprep.subr.bf16.mxu0 %v2541_v12  ;;  %s2845_s30 = scalar_lea.vmem %s3240_s0, %s2487_s10  ;;  %p2607_p12 = pnand %p2606_p11, %p2740_p5 }
  0x1a   : > { %2288 = vmatprep.subr.bf16.mxu1 %v2542_v13  ;;  %v2077_v32 = vld [vmem:[%s2845_s30 + $0x20] sm:$0xff]  ;;  %v2079_v33 = vld [vmem:[%s2845_s30 + $0x30] sm:$0x11]  ;;  %v2078_v42 = vld [vmem:[%s2845_s30 + $0x28] sm:$0xff] }
  0x1b   : > { %v2081_v34 = vld [vmem:[%s2845_s30 + $0x40] sm:$0xff]  ;;  %v2083_v35 = vld [vmem:[%s2845_s30 + $0x50] sm:$0x11]  ;;  %v324_v36 = vshrl.u32 %v2077_v32, 16  ;;  %v327_v37 = vshll.u32 %v2077_v32, 16  ;;  %v333_v38 = vshll.u32 %v2079_v33, 16  ;;  %p2608_p13 = pneg %p2607_p12 }
  0x1c   : > { %2249 = vmatpush3.bf16.msra.mxu0 %v2543_v14  ;;  %v352_v39 = vshrl.u32 %v2081_v34, 16  ;;  %v355_v40 = vshll.u32 %v2081_v34, 16  ;;  %v361_v41 = vshll.u32 %v2083_v35, 16  ;;  %v2082_v43 = vld [vmem:[%s2845_s30 + $0x48] sm:$0xff]  ;;  %v2080_v46 = vld [vmem:[%s2845_s30 + $0x38] sm:$0x11] }
  0x1d   : > { %2289 = vmatpush3.bf16.msra.mxu1 %v2544_v15  ;;  %2250 = vmatprep.subr.bf16.mxu0 %v2545_v16  ;;  %v326_v44 = vrot.slane %v324_v36, 4  ;;  %v329_v45 = vrot.slane %v327_v37, 5  ;;  %v2084_v47 = vld [vmem:[%s2845_s30 + $0x58] sm:$0x11]  ;;  %v335_v48 = vrot.slane %v333_v38, 5  ;;  %v338_v53 = vshrl.u32 %v2078_v42, 16 }
  0x1e   : > { %2290 = vmatprep.subr.bf16.mxu1 %v2546_v17  ;;  %v354_v49 = vrot.slane %v352_v39, 4  ;;  %v357_v50 = vrot.slane %v355_v40, 5  ;;  %v363_v51 = vrot.slane %v361_v41, 5  ;;  %v341_v54 = vshll.u32 %v2078_v42, 16  ;;  %v2085_v11 = vld [vmem:[%s2845_s30 + $0x60] sm:$0xff]  ;;  %v2565_v36 = vld [vmem:[%s3241_s1 + $0x150] sm:$0xff]  }
  0x1f   : > { %v330_v52 = vor.u32 %v329_v45, %v326_v44  ;;  %v347_v55 = vshll.u32 %v2080_v46, 16  ;;  %v366_v59 = vshrl.u32 %v2082_v43, 16  ;;  %v369_v60 = vshll.u32 %v2082_v43, 16  ;;  %v2087_v15 = vld [vmem:[%s2845_s30 + $0x70] sm:$0x11]  ;;  %v2089_v16 = vld [vmem:[%s2845_s30 + $0x80] sm:$0xff] }
  0x20   : > { %2251 = vmatpush3.bf16.msra.mxu0 %v2547_v18  ;;  %v358_v58 = vor.u32 %v357_v50, %v354_v49  ;;  %v375_v61 = vshll.u32 %v2084_v47, 16  ;;  %v340_v63 = vrot.slane %v338_v53, 4  ;;  %v343_v0 = vrot.slane %v341_v54, 5  ;;  %v2091_v17 = vld [vmem:[%s2845_s30 + $0x90] sm:$0x11]  ;;  %v2567_v45 = vld [vmem:[%s3241_s1 + $0x180] sm:$0xff]  }
  0x21   : > { %2291 = vmatpush3.bf16.msra.mxu1 %v2548_v19  ;;  %2252 = vmatprep.subr.bf16.mxu0 %v2549_v20  ;;  %v331_v62 = vrot.slane %v330_v52, 4  ;;  %v368_v2 = vrot.slane %v366_v59, 4  ;;  %v371_v3 = vrot.slane %v369_v60, 5  ;;  %v349_v6 = vrot.slane %v347_v55, 5  ;;  %v2563_v19 = vld [vmem:[%s3241_s1 + $0x148] sm:$0xff]   ;;  %v2566_v50 = vld [vmem:[%s3241_s1 + $0x110] sm:$0xff]  }
  0x22   : > { %2292 = vmatprep.subr.bf16.mxu1 %v2550_v21  ;;  %v359_v1 = vrot.slane %v358_v58, 4  ;;  %v344_v5 = vor.u32 %v343_v0, %v340_v63  ;;  %v377_v9 = vrot.slane %v375_v61, 5  ;;  %v380_v20 = vshrl.u32 %v2085_v11, 16  ;;  %v2092_v35 = vld [vmem:[%s2845_s30 + $0x98] sm:$0x11] }
  0x23   : > { %v336_v4 = vsel %vm2866_vm2, %v331_v62, %v335_v48  ;;  %v372_v8 = vor.u32 %v371_v3, %v368_v2  ;;  %v383_v21 = vshll.u32 %v2085_v11, 16  ;;  %v431_v54 = vshll.u32 %v2092_v35, 16  ;;  %v2568_v59 = vld [vmem:[%s3241_s1 + $0x158] sm:$0xff]   ;;  %v2099_v11 = vld [vmem:[%s2845_s30 + $0xd0] sm:$0x11]  ;;  %v2572_v35 = vld [vmem:[%s3241_s1 + $0x120] sm:$0xff]  }
  0x24   : > { %2253 = vmatpush3.bf16.msra.mxu0 %v2551_v22  ;;  %v364_v7 = vsel %vm2866_vm2, %v359_v1, %v363_v51  ;;  %v2878_v14 = vrot.slane %v344_v5, 4  ;;  %v389_v22 = vshll.u32 %v2087_v15, 16  ;;  %v382_v32 = vrot.slane %v380_v20, 4  ;;  %v2569_v2 = vld [vmem:[%s3241_s1 + $0x118] sm:$0xff]   ;;  %v2213_v57 = vld [vmem:[%s2845_s30 + $0x2c] sm:$0xf] }
  0x25   : > { %2293 = vmatpush3.bf16.msra.mxu1 %v2552_v23  ;;  %2254 = vmatprep.subr.bf16.mxu0 %v2553_v24  ;;  %v2109_v12 = vcombine.low %v336_v4, %v364_v7  ;;  %v2110_v13 = vcombine.high %v336_v4, %v364_v7  ;;  %v2883_v18 = vrot.slane %v372_v8, 4  ;;  %v2086_v23 = vld [vmem:[%s2845_s30 + $0x68] sm:$0xff]  ;;  %v385_v33 = vrot.slane %v383_v21, 5  ;;  %v2093_v7 = vld [vmem:[%s2845_s30 + $0xa0] sm:$0xff] }
  0x26   : > { %2294 = vmatprep.subr.bf16.mxu1 %v2554_v25  ;;  %v350_v24 = vsel %vm2866_vm2, %v2878_v14, %v349_v6  ;;  %v2564_v25 = vld [vmem:[%s3241_s1 + $0x108] sm:$0xff]   ;;  %v391_v34 = vrot.slane %v389_v22, 5  ;;  %v394_v43 = vshrl.u32 %v2086_v23, 16  ;;  %v397_v44 = vshll.u32 %v2086_v23, 16 }
  0x27   : > { %835 = vmatprep.mubr.bf16.mxu0 %v2110_v13  ;;  %v386_v41 = vor.u32 %v385_v33, %v382_v32  ;;  %v433_v63 = vrot.slane %v431_v54, 5  ;;  %v2570_v6 = vld [vmem:[%s3241_s1 + $0x188] sm:$0xff]   ;;  %v436_v13 = vshrl.u32 %v2093_v7, 16  ;;  %v439_v15 = vshll.u32 %v2093_v7, 16 }
  0x28   : > { %2255 = vmatpush3.bf16.msra.mxu0 %v2555_v26  ;;  %v408_v26 = vshrl.u32 %v2089_v16, 16  ;;  %v396_v52 = vrot.slane %v394_v43, 4  ;;  %v399_v53 = vrot.slane %v397_v44, 5  ;;  %v473_v23 = vshll.u32 %v2099_v11, 16  ;;  %v2102_v11 = vld [vmem:[%s2845_s30 + $0xe8] sm:$0xff] }
  0x29   : > { %2295 = vmatpush3.bf16.msra.mxu1 %v2556_v27  ;;  %2256 = vmatprep.subr.bf16.mxu0 %v2557_v28  ;;  %v411_v27 = vshll.u32 %v2089_v16, 16  ;;  %v417_v28 = vshll.u32 %v2091_v17, 16  ;;  %v387_v51 = vrot.slane %v386_v41, 4  ;;  %v2094_v17 = vld [vmem:[%s2845_s30 + $0xa8] sm:$0xff] }
  0x2a   : > { %2296 = vmatprep.subr.bf16.mxu1 %v2558_v29  ;;  %v2088_v29 = vld [vmem:[%s2845_s30 + $0x78] sm:$0x11]  ;;  %v410_v39 = vrot.slane %v408_v26, 4  ;;  %v400_v61 = vor.u32 %v399_v53, %v396_v52  ;;  %v475_v33 = vrot.slane %v473_v23, 5 }
  0x2b   : > { %v413_v40 = vrot.slane %v411_v27, 5  ;;  %v419_v42 = vrot.slane %v417_v28, 5  ;;  %v403_v47 = vshll.u32 %v2088_v29, 16  ;;  %v392_v60 = vsel %vm2866_vm2, %v387_v51, %v391_v34  ;;  %v2571_v34 = vld [vmem:[%s3241_s1 + $0x160] sm:$0xff]  }
  0x2c   : > { %2257 = vmatpush3.bf16.msra.mxu0 %v2559_v30  ;;  %v2090_v30 = vld [vmem:[%s2845_s30 + $0x88] sm:$0xff]  ;;  %v2920_v4 = vrot.slane %v400_v61, 4  ;;  %v438_v28 = vrot.slane %v436_v13, 4  ;;  %v441_v29 = vrot.slane %v439_v15, 5 }
  0x2d   : > { %2297 = vmatpush3.bf16.msra.mxu1 %v2560_v31  ;;  %2322 = vmatprep.subr.bf16.mxu0 %v2561_v56  ;;  %v378_v31 = vsel %vm2866_vm2, %v2883_v18, %v377_v9  ;;  %v414_v46 = vor.u32 %v413_v40, %v410_v39  ;;  %v422_v48 = vshrl.u32 %v2090_v30, 16  ;;  %v425_v49 = vshll.u32 %v2090_v30, 16  ;;  %v2095_v9 = vld [vmem:[%s2845_s30 + $0xb0] sm:$0x11] }
  0x2e   : > { %v2111_v37 = vcombine.low %v350_v24, %v378_v31  ;;  %v2112_v38 = vcombine.high %v350_v24, %v378_v31  ;;  %2403 = vmatprep.subr.bf16.mxu1 %v2567_v45  ;;  %v405_v62 = vrot.slane %v403_v47, 5  ;;  %v445_v16 = vshll.u32 %v2095_v9, 16  ;;  %v2098_v24 = vld [vmem:[%s2845_s30 + $0xc8] sm:$0xff]  ;;  %v2573_v40 = vld [vmem:[%s3241_s1 + $0x190] sm:$0xff]  }
  0x2f   : > { %836 = vmatmul.mubr.bf16.vlgmr.msra.gmra.mrb[0].mxu0 %v2109_v12  ;;  %v415_v55 = vrot.slane %v414_v46, 4  ;;  %v424_v56 = vrot.slane %v422_v48, 4  ;;  %v427_v58 = vrot.slane %v425_v49, 5  ;;  %v481_v43 = vshll.u32 %v2098_v24, 16 }
  0x30   : > { %2323 = vmatpush3.bf16.msra.mxu0 %v2562_v10  ;;  %900 = vmatprep.mubr.bf16.mxu1 %v2112_v38  ;;  %v2097_v10 = vld [vmem:[%s2845_s30 + $0xc0] sm:$0xff]  ;;  %v406_v12 = vsel %vm2866_vm2, %v2920_v4, %v405_v62  ;;  %v447_v30 = vrot.slane %v445_v16, 5  ;;  %v453_v38 = vshll.u32 %v2094_v17, 16 }
  0x31   : > { %2324 = vmatprep.subr.bf16.mxu0 %v2563_v19  ;;  %901 = vmatmul.mubr.bf16.vlgmr.msra.gmra.mrb[0].mxu1 %v2111_v37  ;;  %v420_v0 = vsel %vm2866_vm2, %v415_v55, %v419_v42  ;;  %v428_v1 = vor.u32 %v427_v58, %v424_v56  ;;  %v2096_v19 = vld [vmem:[%s2845_s30 + $0xb8] sm:$0x11]  ;;  %v464_v21 = vshrl.u32 %v2097_v10, 16  ;;  %v467_v22 = vshll.u32 %v2097_v10, 16 }
  0x32   : > { %2404 = vmatpush3.bf16.msra.mxu1 %v2567_v45  ;;  %v2114_v3 = vcombine.high %v392_v60, %v420_v0  ;;  %v2113_v5 = vcombine.low %v392_v60, %v420_v0  ;;  %v450_v37 = vshrl.u32 %v2094_v17, 16  ;;  %v459_v39 = vshll.u32 %v2096_v19, 16  ;;  %v2574_v45 = vld [vmem:[%s3241_s1 + $0x168] sm:$0xff]   ;;  %v2101_v0 = vld [vmem:[%s2845_s30 + $0xe0] sm:$0xff] }
  0x33   : > { %v2926_v8 = vrot.slane %v428_v1, 4  ;;  %2405 = vmatprep.subr.bf16.mxu1 %v2570_v6  ;;  %v466_v31 = vrot.slane %v464_v21, 4  ;;  %v469_v32 = vrot.slane %v467_v22, 5  ;;  %v478_v42 = vshrl.u32 %v2098_v24, 16  ;;  %v2106_v19 = vld [vmem:[%s2845_s30 + $0x108] sm:$0xff] }
  0x34   : > { %2325 = vmatpush3.bf16.msra.mxu0 %v2564_v25  ;;  %843 = vmatprep.mubr.bf16.mxu0 %v2114_v3  ;;  %v2100_v25 = vld [vmem:[%s2845_s30 + $0xd8] sm:$0x11]  ;;  %v452_v47 = vrot.slane %v450_v37, 4  ;;  %v455_v48 = vrot.slane %v453_v38, 5  ;;  %v483_v52 = vrot.slane %v481_v43, 5  ;;  %v2105_v3 = vld [vmem:[%s2845_s30 + $0x100] sm:$0xff] }
  0x35   : > { %2326 = vmatprep.subr.bf16.mxu0 %v2565_v36  ;;  %v434_v20 = vsel %vm2866_vm2, %v2926_v8, %v433_v63  ;;  %v442_v36 = vor.u32 %v441_v29, %v438_v28  ;;  %v470_v41 = vor.u32 %v469_v32, %v466_v31  ;;  %v487_v44 = vshll.u32 %v2100_v25, 16  ;;  %v2576_v63 = vld [vmem:[%s3241_s1 + $0x198] sm:$0xff]   ;;  %v2577_v29 = vld [vmem:[%s3241_s1 + $0x170] sm:$0xff]  }
  0x36   : > { %v2116_v26 = vcombine.high %v406_v12, %v434_v20  ;;  %v2115_v27 = vcombine.low %v406_v12, %v434_v20  ;;  %2406 = vmatpush3.bf16.msra.mxu1 %v2570_v6  ;;  %v480_v51 = vrot.slane %v478_v42, 4  ;;  %v456_v54 = vor.u32 %v455_v48, %v452_v47  ;;  %v2104_v12 = vld [vmem:[%s2845_s30 + $0xf8] sm:$0x11] }
  0x37   : > { %844 = vmatmul.mubr.bf16.gmra.mrb[4].mxu0 %v2113_v5  ;;  %v443_v46 = vrot.slane %v442_v36, 4  ;;  %2407 = vmatprep.subr.bf16.mxu1 %v2573_v40  ;;  %v471_v49 = vrot.slane %v470_v41, 4  ;;  %v489_v58 = vrot.slane %v487_v44, 5  ;;  %v2107_v5 = vld [vmem:[%s2845_s30 + $0x110] sm:$0x11]  ;;  %v492_v7 = vshrl.u32 %v2101_v0, 16 }
  0x38   : > { %2327 = vmatpush3.bf16.msra.mxu0 %v2566_v50  ;;  %908 = vmatprep.mubr.bf16.mxu1 %v2116_v26  ;;  %v461_v50 = vrot.slane %v459_v39, 5  ;;  %v484_v56 = vor.u32 %v483_v52, %v480_v51  ;;  %v2960_v61 = vrot.slane %v456_v54, 4  ;;  %v495_v9 = vshll.u32 %v2101_v0, 16  ;;  %v2108_v20 = vld [vmem:[%s2845_s30 + $0x118] sm:$0x11] }
  0x39   : > { %2328 = vmatprep.subr.bf16.mxu0 %v2568_v59  ;;  %909 = vmatmul.mubr.bf16.gmra.mrb[4].mxu1 %v2115_v27  ;;  %v448_v53 = vsel %vm2866_vm2, %v443_v46, %v447_v30  ;;  %v476_v55 = vsel %vm2866_vm2, %v471_v49, %v475_v33  ;;  %v2575_v59 = vld [vmem:[%s3241_s1 + $0x128] sm:$0xff]   ;;  %v520_v15 = vshrl.u32 %v2105_v3, 16  ;;  %v523_v16 = vshll.u32 %v2105_v3, 16  ;;  %v2578_v30 = vld [vmem:[%s3241_s1 + $0x130] sm:$0xff]  }
  0x3a   : > { %2408 = vmatpush3.bf16.msra.mxu1 %v2573_v40  ;;  %v2118_v60 = vcombine.high %v448_v53, %v476_v55  ;;  %v2117_v62 = vcombine.low %v448_v53, %v476_v55  ;;  %v2966_v1 = vrot.slane %v484_v56, 4  ;;  %v462_v6 = vsel %vm2866_vm2, %v2960_v61, %v461_v50  ;;  %v2580_v40 = vld [vmem:[%s3241_s1 + $0x178] sm:$0xff]  }
  0x3b   : > { %2409 = vmatprep.subr.bf16.mxu1 %v2576_v63  ;;  %v529_v17 = vshll.u32 %v2107_v5, 16  ;;  %v494_v23 = vrot.slane %v492_v7, 4  ;;  %v497_v24 = vrot.slane %v495_v9, 5  ;;  %v522_v26 = vrot.slane %v520_v15, 4  ;;  %v2581_v53 = vld [vmem:[%s3241_s1 + $0x138] sm:$0xff]   ;;  %v2583_v7 = vld [vmem:[%s3241_s1 + $0x1c0] sm:$0xff]  }
  0x3c   : > { %2329 = vmatpush3.bf16.msra.mxu0 %v2569_v2  ;;  %v2103_v2 = vld [vmem:[%s2845_s30 + $0xf0] sm:$0x11]  ;;  %851 = vmatprep.mubr.bf16.mxu0 %v2118_v60  ;;  %v490_v13 = vsel %vm2866_vm2, %v2966_v1, %v489_v58  ;;  %v525_v27 = vrot.slane %v523_v16, 5  ;;  %v506_v32 = vshrl.u32 %v2102_v11, 16  ;;  %v509_v33 = vshll.u32 %v2102_v11, 16  ;;  %v2582_v58 = vld [vmem:[%s3241_s1 + $0x1a8] sm:$0xff]  }
  0x3d   : > { %2330 = vmatprep.subr.bf16.mxu0 %v2571_v34  ;;  %v501_v10 = vshll.u32 %v2103_v2, 16  ;;  %v2120_v21 = vcombine.high %v462_v6, %v490_v13  ;;  %v2119_v22 = vcombine.low %v462_v6, %v490_v13  ;;  %v531_v28 = vrot.slane %v529_v17, 5  ;;  %v2584_v11 = vld [vmem:[%s3241_s1 + $0x1b0] sm:$0xff]  }
  0x3e   : > { %2410 = vmatpush3.bf16.msra.mxu1 %v2576_v63  ;;  %v498_v31 = vor.u32 %v497_v24, %v494_v23  ;;  %v515_v34 = vshll.u32 %v2104_v12, 16  ;;  %v526_v36 = vor.u32 %v525_v27, %v522_v26  ;;  %v534_v37 = vshrl.u32 %v2106_v19, 16  ;;  %v953_v63 = vld [vmem:[%s2845_s30 + $0x38] sm:$0x11]  ;;  %v1327_v27 = vld [vmem:[%s2845_s30 + $0xc] sm:$0xf] }
  0x3f   : > { %852 = vmatmul.mubr.bf16.gmra.mrb[8].mxu0 %v2117_v62  ;;  %v503_v25 = vrot.slane %v501_v10, 5  ;;  %916 = vmatprep.mubr.bf16.mxu1 %v2120_v21  ;;  %v537_v38 = vshll.u32 %v2106_v19, 16  ;;  %v543_v39 = vshll.u32 %v2108_v20, 16  ;;  %v508_v42 = vrot.slane %v506_v32, 4  ;;  %v951_v62 = vld [vmem:[%s2845_s30 + $0x18] sm:$0x11] }
  0x40   : > { %2331 = vmatpush3.bf16.msra.mxu0 %v2572_v35  ;;  %v2579_v35 = vld [vmem:[%s3241_s1 + $0x1a0] sm:$0xff]   ;;  %v499_v41 = vrot.slane %v498_v31, 4  ;;  %v511_v43 = vrot.slane %v509_v33, 5  ;;  %v527_v44 = vrot.slane %v526_v36, 4  ;;  %v536_v46 = vrot.slane %v534_v37, 4  ;;  %v2586_v20 = vld [vmem:[%s3241_s1 + $0x1b8] sm:$0xff]  }
  0x41   : > { %2332 = vmatprep.subr.bf16.mxu0 %v2574_v45  ;;  %917 = vmatmul.mubr.bf16.gmra.mrb[8].mxu1 %v2119_v22  ;;  %v517_v45 = vrot.slane %v515_v34, 5  ;;  %v539_v47 = vrot.slane %v537_v38, 5  ;;  %v545_v52 = vrot.slane %v543_v39, 5  ;;  %v1008_v5 = vshll.u32 %v951_v62, 16  ;;  %v955_v21 = vld [vmem:[%s2845_s30 + $0x58] sm:$0x11] }
  0x42   : > { %2411 = vmatprep.subr.bf16.mxu1 %v2579_v35  ;;  %v504_v48 = vsel %vm2866_vm2, %v499_v41, %v503_v25  ;;  %v512_v49 = vor.u32 %v511_v43, %v508_v42  ;;  %v532_v50 = vsel %vm2866_vm2, %v527_v44, %v531_v28  ;;  %v1022_v6 = vshll.u32 %v953_v63, 16  ;;  %v957_v22 = vld [vmem:[%s2845_s30 + $0x78] sm:$0x11]  ;;  %v1329_v34 = vld [vmem:[%s2845_s30 + $0x4c] sm:$0xf] }
  0x43   : > { %2412 = vmatpush3.bf16.msra.mxu1 %v2579_v35  ;;  %v540_v51 = vor.u32 %v539_v47, %v536_v46  ;;  %v2122_v54 = vcombine.high %v504_v48, %v532_v50  ;;  %v2121_v56 = vcombine.low %v504_v48, %v532_v50  ;;  %v1010_v19 = vrot.slane %v1008_v5, 5  ;;  %v1330_v37 = vld [vmem:[%s2845_s30 + $0x6c] sm:$0xf]  ;;  %v959_v42 = vld [vmem:[%s2845_s30 + $0x98] sm:$0x11] }
  0x44   : > { %2333 = vmatpush3.bf16.msra.mxu0 %v2575_v59  ;;  %v3000_v55 = vrot.slane %v512_v49, 4  ;;  %v950_v59 = vld [vmem:[%s2845_s30 + $0x8] sm:$0xff]  ;;  %2413 = vmatprep.subr.bf16.mxu1 %v2582_v58  ;;  %v1024_v16 = vrot.slane %v1022_v6, 5  ;;  %v1036_v23 = vshll.u32 %v955_v21, 16  ;;  %v1050_v26 = vshll.u32 %v957_v22, 16  ;;  %v2591_v6 = vld [vmem:[%s3241_s1 + $0x1e0] sm:$0xff]  }
  0x45   : > { %2334 = vmatprep.subr.bf16.mxu0 %v2577_v29  ;;  %v541_v60 = vrot.slane %v540_v51, 4  ;;  %v999_v0 = vshrl.u32 %v950_v59, 16  ;;  %859 = vmatprep.mubr.bf16.mxu0 %v2122_v54  ;;  %v1002_v3 = vshll.u32 %v950_v59, 16  ;;  %v1328_v29 = vld [vmem:[%s2845_s30 + $0x2c] sm:$0xf]  ;;  %v1064_v44 = vshll.u32 %v959_v42, 16 }
  0x46   : > { %v518_v2 = vsel %vm2866_vm2, %v3000_v55, %v517_v45  ;;  %v1025_v25 = vsel %vm2866_vm2, %v2878_v14, %v1024_v16  ;;  %v1038_v28 = vrot.slane %v1036_v23, 5  ;;  %v1052_v32 = vrot.slane %v1050_v26, 5  ;;  %v2585_v38 = vld [vmem:[%s3241_s1 + $0x1c8] sm:$0xff]   ;;  %v961_v43 = vld [vmem:[%s2845_s30 + $0xb8] sm:$0x11]  ;;  %v2599_v21 = vld [vmem:[%s3241_s1 + $0x230] sm:$0xff]  }
  0x47   : > { %v546_v9 = vsel %vm2866_vm2, %v541_v60, %v545_v52  ;;  %860 = vmatmul.mubr.bf16.gmra.mrb[12].mxu0 %v2121_v56  ;;  %v1001_v10 = vrot.slane %v999_v0, 4  ;;  %2414 = vmatpush3.bf16.msra.mxu1 %v2582_v58  ;;  %v1004_v15 = vrot.slane %v1002_v3, 5  ;;  %v2181_v33 = vcombine.low %v1327_v27, %v1328_v29  ;;  %v963_v48 = vld [vmem:[%s2845_s30 + $0xd8] sm:$0x11]  ;;  %v2592_v52 = vld [vmem:[%s3241_s1 + $0x210] sm:$0xff]   ;;  %v2598_v16 = vld [vmem:[%s3241_s1 + $0x228] sm:$0xff]  }
  0x48   : > { %2335 = vmatpush3.bf16.msra.mxu0 %v2578_v30  ;;  %v2124_v12 = vcombine.high %v518_v2, %v546_v9  ;;  %v2123_v13 = vcombine.low %v518_v2, %v546_v9  ;;  %2415 = vmatprep.subr.bf16.mxu1 %v2584_v11  ;;  %v2588_v30 = vld [vmem:[%s3241_s1 + $0x200] sm:$0xff]   ;;  %v1039_v36 = vsel %vm2866_vm2, %v2883_v18, %v1038_v28  ;;  %v2590_v18 = vld [vmem:[%s3241_s1 + $0x208] sm:$0xff]   ;;  %v1078_v45 = vshll.u32 %v961_v43, 16  ;;  %v2597_v23 = vld [vmem:[%s3241_s1 + $0x1f8] sm:$0xff]  }
  0x49   : > { %2336 = vmatprep.subr.bf16.mxu0 %v2580_v40  ;;  %v1005_v17 = vor.u32 %v1004_v15, %v1001_v10  ;;  %v1053_v39 = vsel %vm2866_vm2, %v2920_v4, %v1052_v32  ;;  %v2182_v40 = vcombine.low %v1329_v34, %v1330_v37  ;;  %v2587_v4 = vld [vmem:[%s3241_s1 + $0x1d0] sm:$0xff]   ;;  %v1066_v46 = vrot.slane %v1064_v44, 5  ;;  %v1331_v60 = vld [vmem:[%s2845_s30 + $0x8c] sm:$0xf]  ;;  %v2196_v26 = vld [vmem:[%s2845_s30 + $0x84] sm:$0xf] }
  0x4a   : > { %924 = vmatprep.mubr.bf16.mxu1 %v2124_v12  ;;  %v2160_v41 = vcombine.high %v1039_v36, %v1053_v39  ;;  %v1080_v47 = vrot.slane %v1078_v45, 5  ;;  %v2159_v49 = vcombine.low %v1039_v36, %v1053_v39  ;;  %v1092_v54 = vshll.u32 %v963_v48, 16  ;;  %v1332_v63 = vld [vmem:[%s2845_s30 + $0xac] sm:$0xf]  ;;  %v2595_v15 = vld [vmem:[%s3241_s1 + $0x1f0] sm:$0xff]   ;;  %v2601_v42 = vld [vmem:[%s3243_s3] sm:$0xff]  }
  0x4b   : > { %925 = vmatmul.mubr.bf16.gmra.mrb[12].mxu1 %v2123_v13  ;;  %v1006_v24 = vrot.slane %v1005_v17, 4  ;;  %v1067_v50 = vsel %vm2866_vm2, %v2926_v8, %v1066_v46  ;;  %v2589_v8 = vld [vmem:[%s3241_s1 + $0x1d8] sm:$0xff]   ;;  %v1333_v0 = vld [vmem:[%s2845_s30 + $0xcc] sm:$0xf]  ;;  %v2183_v2 = vcombine.low %v1331_v60, %v1332_v63  ;;  %v2193_v17 = vld [vmem:[%s2845_s30 + $0x24] sm:$0xf] }
  0x4c   : > { %2337 = vmatpush3.bf16.msra.mxu0 %v2581_v53  ;;  %2416 = vmatpush3.bf16.msra.mxu1 %v2584_v11  ;;  %v1081_v51 = vsel %vm2866_vm2, %v2960_v61, %v1080_v47  ;;  %v965_v53 = vld [vmem:[%s2845_s30 + $0xf8] sm:$0x11]  ;;  %v1094_v59 = vrot.slane %v1092_v54, 5  ;;  %v1334_v3 = vld [vmem:[%s2845_s30 + $0xec] sm:$0xf]  ;;  %v2596_v11 = vld [vmem:[%s3241_s1 + $0x220] sm:$0xff]  }
  0x4d   : > { %2427 = vmatprep.subr.bf16.mxu0 %v2583_v7  ;;  %2417 = vmatprep.subr.bf16.mxu1 %v2586_v20  ;;  %v1011_v31 = vsel %vm2866_vm2, %v1006_v24, %v1010_v19  ;;  %v2162_v56 = vcombine.high %v1067_v50, %v1081_v51  ;;  %v1106_v58 = vshll.u32 %v965_v53, 16  ;;  %v2594_v61 = vld [vmem:[%s3241_s1 + $0x218] sm:$0xff]   ;;  %v2184_v5 = vcombine.low %v1333_v0, %v1334_v3  ;;  %v2194_v19 = vld [vmem:[%s2845_s30 + $0x44] sm:$0xf]  ;;  %v2215_v29 = vld [vmem:[%s2845_s30 + $0x6c] sm:$0xf] }
  0x4e   : > { %v2157_v35 = vcombine.low %v1011_v31, %v1025_v25  ;;  %v2158_v14 = vcombine.high %v1011_v31, %v1025_v25  ;;  %2419 = vmatprep.mubr.bf16.mxu1 %v2181_v33  ;;  %v2161_v10 = vcombine.low %v1067_v50, %v1081_v51  ;;  %v2201_v22 = vcombine.low %v2193_v17, %v2194_v19  ;;  %v2600_v24 = vld [vmem:[%s3241_s1 + $0x238] sm:$0xff]   ;;  %v2195_v25 = vld [vmem:[%s2845_s30 + $0x64] sm:$0xf]  ;;  %v2217_v32 = vld [vmem:[%s2845_s30 + $0xac] sm:$0xf] }
  0x4f   : > { %v1108_v62 = vrot.slane %v1106_v58, 5  ;;  %v2197_v27 = vld [vmem:[%s2845_s30 + $0xa4] sm:$0xf]  ;;  %v2202_v31 = vcombine.low %v2195_v25, %v2196_v26  ;;  %v2218_v33 = vld [vmem:[%s2845_s30 + $0xcc] sm:$0xf]  ;;  %v2669_v43 = vmov 0.0  }
  0x50   : > { %2418 = vmatpush3.bf16.msra.mxu1 %v2586_v20  ;;  %1270 = vmatprep.mubr.bf16.mxu0 %v2158_v14  ;;  %v2198_v28 = vld [vmem:[%s2845_s30 + $0xc4] sm:$0xf]  ;;  %v2223_v14 = vcombine.low %v2217_v32, %v2218_v33  ;;  %v2220_v39 = vld [vmem:[%s2845_s30 + $0x10c] sm:$0xf]  ;;  %v2603_v44 = vld [vmem:[%s3243_s3 + $0x10] sm:$0xff]  }
  0x51   : > { %2451 = vmatprep.subr.bf16.mxu1 %v2588_v30  ;;  %1271 = vmatmul.mubr.bf16.vlgmr.msra.gmra.mrb[16].mxu0 %v2157_v35  ;;  %v1109_v9 = vsel %vm2866_vm2, %v3000_v55, %v1108_v62  ;;  %v2214_v55 = vld [vmem:[%s2845_s30 + $0x4c] sm:$0xf]  ;;  %v2203_v34 = vcombine.low %v2197_v27, %v2198_v28  ;;  %v2199_v36 = vld [vmem:[%s2845_s30 + $0xe4] sm:$0xf]  ;;  %v2604_v45 = vld [vmem:[%s3243_s3 + $0x18] sm:$0xff]  }
  0x52   : > { %2428 = vmatpush3.bf16.msra.mxu0 %v2583_v7  ;;  %1278 = vmatprep.mubr.bf16.mxu0 %v2160_v41  ;;  %v1095_v7 = vsel %vm2866_vm2, %v2966_v1, %v1094_v59  ;;  %v2593_v1 = vld [vmem:[%s3241_s1 + $0x1e8] sm:$0xff]   ;;  %v2221_v13 = vcombine.low %v2213_v57, %v2214_v55  ;;  %v2200_v37 = vld [vmem:[%s2845_s30 + $0x104] sm:$0xf] }
  0x53   : > { %2429 = vmatprep.subr.bf16.mxu0 %v2585_v38  ;;  %2420 = vmatmul.mubr.bf16.vlgmr.msra.gmra.mrb[16].mxu1 %v2182_v40  ;;  %v2164_v12 = vcombine.high %v1095_v7, %v1109_v9  ;;  %v2163_v20 = vcombine.low %v1095_v7, %v1109_v9  ;;  %v2204_v40 = vcombine.low %v2199_v36, %v2200_v37 }
  0x54   : > { %2452 = vmatpush3.bf16.msra.mxu1 %v2588_v30  ;;  %2423 = vmatprep.mubr.bf16.mxu1 %v2183_v2  ;;  %v2216_v30 = vld [vmem:[%s2845_s30 + $0x8c] sm:$0xf] }
  0x55   : > { %2453 = vmatprep.subr.bf16.mxu1 %v2590_v18  ;;  %v2222_v35 = vcombine.low %v2215_v29, %v2216_v30 }
  0x56   : > { %2430 = vmatpush3.bf16.msra.mxu0 %v2585_v38  ;;  %v2219_v38 = vld [vmem:[%s2845_s30 + $0xec] sm:$0xf]  ;;  %s2671_s30 = smov [#allocation3]  }
  0x57   : > { %2431 = vmatprep.subr.bf16.mxu0 %v2587_v4  ;;  %v2224_v41 = vcombine.low %v2219_v38, %v2220_v39  ;;  %s2609_s17 = sshll.u32 %s2671_s30, 4  ;;  %s2610_s17 = int_to_ptr.vmem [resolvable:$false] %s2609_s17 }
  0x58   : > { %2454 = vmatpush3.bf16.msra.mxu1 %v2590_v18  ;;  %v2602_v18 = vld [vmem:[%s3243_s3 + $0x8] sm:$0xff]   ;;  %s2611_s26 = scalar_lea.vmem %s2610_s17, 32  ;;  %p2612_p0 = scmp.lt.s32.totalorder %s3200_s14, %s2610_s17 }
  0x59   : > { %1279 = vmatmul.mubr.bf16.gmra.mrb[20].mxu0 %v2159_v49  ;;  %2455 = vmatprep.subr.bf16.mxu1 %v2592_v52  ;;  %p2613_p1 = scmp.lt.s32.totalorder %s2611_s26, %s2605_s22 }
  0x5a   : > { %2432 = vmatpush3.bf16.msra.mxu0 %v2587_v4  ;;  %1286 = vmatprep.mubr.bf16.mxu0 %v2162_v56 }
  0x5b   : > { %2433 = vmatprep.subr.bf16.mxu0 %v2589_v8  ;;  %2424 = vmatmul.mubr.bf16.gmra.mrb[20].mxu1 %v2184_v5  ;;  %p2614_p2 = por %p2613_p1, %p2612_p0 }
  0x5c   : > { %2456 = vmatpush3.bf16.msra.mxu1 %v2592_v52  ;;  %2467 = vmatprep.mubr.bf16.mxu1 %v2221_v13 }
  0x5d   : > { %2457 = vmatprep.subr.bf16.mxu1 %v2594_v61  ;;  %p2615_p3 = pnand %p2614_p2, %p2608_p13 }
  0x5e   : > { %2434 = vmatpush3.bf16.msra.mxu0 %v2589_v8 }
  0x5f   : > { %2435 = vmatprep.subr.bf16.mxu0 %v2591_v6 }
  0x60   : > { %2458 = vmatpush3.bf16.msra.mxu1 %v2594_v61 }
  0x61   : > { %1287 = vmatmul.mubr.bf16.gmra.mrb[24].mxu0 %v2161_v10  ;;  %2459 = vmatprep.subr.bf16.mxu1 %v2596_v11 }
  0x62   : > { %2436 = vmatpush3.bf16.msra.mxu0 %v2591_v6  ;;  %1294 = vmatprep.mubr.bf16.mxu0 %v2164_v12 }
  0x63   : > { %2437 = vmatprep.subr.bf16.mxu0 %v2593_v1 }
  0x64   : > { %2460 = vmatpush3.bf16.msra.mxu1 %v2596_v11 }
  0x65   : > { %2461 = vmatprep.subr.bf16.mxu1 %v2598_v16 }
  0x66   : > { %2438 = vmatpush3.bf16.msra.mxu0 %v2593_v1 }
  0x67   : > { %2439 = vmatprep.subr.bf16.mxu0 %v2595_v15 }
  0x68   : > { %2462 = vmatpush3.bf16.msra.mxu1 %v2598_v16 }
  0x69   : > { %1295 = vmatmul.mubr.bf16.gmra.mrb[28].mxu0 %v2163_v20  ;;  %2463 = vmatprep.subr.bf16.mxu1 %v2599_v21 }
  0x6a   : > { %2440 = vmatpush3.bf16.msra.mxu0 %v2595_v15  ;;  %2443 = vmatprep.mubr.bf16.mxu0 %v2201_v22 }
  0x6b   : > { %2441 = vmatprep.subr.bf16.mxu0 %v2597_v23 }
  0x6c   : > { %2464 = vmatpush3.bf16.msra.mxu1 %v2599_v21 }
  0x6d   : > { %2465 = vmatprep.subr.bf16.mxu1 %v2600_v24 }
  0x6e   : > { %2442 = vmatpush3.bf16.msra.mxu0 %v2597_v23 }
  0x6f   : > { %2475 = vmatprep.subr.bf16.mxu0 %v2669_v43 }
  0x70   : > { %2466 = vmatpush3.bf16.msra.mxu1 %v2600_v24 }
  0x71   : > { %2444 = vmatmul.mubr.bf16.vlgmr.msra.gmra.mrb[32].mxu0 %v2202_v31 }
  0x72   : > { %2447 = vmatprep.mubr.bf16.mxu0 %v2203_v34  ;;  %2476 = vmatpush3.bf16.msra.mxu0 %v2601_v42 }
  0x73   : > { %2468 = vmatmul.mubr.bf16.vlgmr.msra.gmra.mrb[24].mxu1 %v2222_v35  ;;  %2477 = vmatprep.subr.bf16.mxu0 %v2669_v43 }
  0x74   : > { %2471 = vmatprep.mubr.bf16.mxu1 %v2223_v14 }
  0x76   : > { %2478 = vmatpush3.bf16.msra.mxu0 %v2602_v18 }
  0x77   : > { %2479 = vmatprep.subr.bf16.mxu0 %v2669_v43 }
  0x79   : > { %2448 = vmatmul.mubr.bf16.gmra.mrb[36].mxu0 %v2204_v40 }
  0x7a   : > { %2483 = vmatprep.mubr.msk.bf16.mxu0 %vm2670_vm3, %v2669_v43  ;;  %2480 = vmatpush3.bf16.msra.mxu0 %v2603_v44 }
  0x7b   : > { %2472 = vmatmul.mubr.bf16.gmra.mrb[28].mxu1 %v2224_v41  ;;  %2481 = vmatprep.subr.bf16.mxu0 %v2669_v43 }
  0x7e   : > { %2482 = vmatpush3.bf16.msra.mxu0 %v2604_v45 }
 0x102   : > { %v2258_v4 = vpop.f32.mrb[0].mxu0 }
 0x103   : > { %v2259_v46 = vpop.f32.mrb[1].mxu0 }
 0x104   : > { %v2260_v47 = vadd.f32 %v2259_v46, %v2258_v4  ;;  %v2261_v48 = vpop.f32.mrb[2].mxu0  ;;  %v2298_v50 = vpop.f32.mrb[0].mxu1 }
 0x105   : > { %v2262_v49 = vpop.f32.mrb[3].mxu0  ;;  %v2299_v52 = vpop.f32.mrb[1].mxu1 }
 0x106   : > { %v2263_v51 = vadd.f32 %v2262_v49, %v2261_v48  ;;  %v2300_v53 = vadd.f32 %v2299_v52, %v2298_v50  ;;  %v2301_v54 = vpop.f32.mrb[2].mxu1 }
 0x107   : > { %v2302_v56 = vpop.f32.mrb[3].mxu1 }
 0x108   : > { %v903_v58 = vadd.f32 %v2300_v53, %v2260_v47  ;;  %v2303_v8 = vadd.f32 %v2302_v56, %v2301_v54 }
 0x10a   : > { %934 = vst.msk [vmem:[#allocation2] sm:$0xff] %vm933_vm4, %v903_v58  ;;  %v906_v59 = vadd.f32 %v2303_v8, %v2263_v51  ;;  %v2264_v60 = vpop.f32.mrb[4].mxu0 }
 0x10b   : > { %v2265_v61 = vpop.f32.mrb[5].mxu0 }
 0x10c   : > { %935 = vst.msk [vmem:[#allocation2 + $0x8] sm:$0xff] %vm933_vm4, %v906_v59  ;;  %v2266_v62 = vadd.f32 %v2265_v61, %v2264_v60  ;;  %v2267_v63 = vpop.f32.mrb[6].mxu0  ;;  %v2304_v2 = vpop.f32.mrb[4].mxu1 }
 0x10d   : > { %v2268_v0 = vpop.f32.mrb[7].mxu0  ;;  %v2305_v5 = vpop.f32.mrb[5].mxu1 }
 0x10e   : > { %v2269_v3 = vadd.f32 %v2268_v0, %v2267_v63  ;;  %v2306_v6 = vadd.f32 %v2305_v5, %v2304_v2  ;;  %v2307_v7 = vpop.f32.mrb[6].mxu1 }
 0x10f   : > { %v2308_v9 = vpop.f32.mrb[7].mxu1 }
 0x110   : > { %v911_v10 = vadd.f32 %v2306_v6, %v2266_v62  ;;  %v2309_v11 = vadd.f32 %v2308_v9, %v2307_v7 }
 0x111   : > { %v942_v18 = vld [vmem:[#allocation2] sm:$0xff] }
 0x112   : > { %936 = vst.msk [vmem:[#allocation2 + $0x10] sm:$0xff] %vm933_vm4, %v911_v10  ;;  %v914_v12 = vadd.f32 %v2309_v11, %v2269_v3  ;;  %v2270_v1 = vpop.f32.mrb[8].mxu0 }
 0x113   : > { %v2271_v57 = vpop.f32.mrb[9].mxu0  ;;  %v943_v48 = vld [vmem:[#allocation2 + $0x8] sm:$0xff] }
 0x114   : > { %937 = vst.msk [vmem:[#allocation2 + $0x18] sm:$0xff] %vm933_vm4, %v914_v12  ;;  %v2272_v55 = vadd.f32 %v2271_v57, %v2270_v1  ;;  %v2273_v13 = vpop.f32.mrb[10].mxu0  ;;  %v2310_v16 = vpop.f32.mrb[8].mxu1 }
 0x115   : > { %v2274_v15 = vpop.f32.mrb[11].mxu0  ;;  %v2311_v19 = vpop.f32.mrb[9].mxu1 }
 0x116   : > { %v2275_v17 = vadd.f32 %v2274_v15, %v2273_v13  ;;  %v2312_v20 = vadd.f32 %v2311_v19, %v2310_v16  ;;  %v2313_v21 = vpop.f32.mrb[10].mxu1 }
 0x117   : > { %v2314_v22 = vpop.f32.mrb[11].mxu1 }
 0x118   : > { %v919_v23 = vadd.f32 %v2312_v20, %v2272_v55  ;;  %v2315_v24 = vadd.f32 %v2314_v22, %v2313_v21 }
 0x119   : > { %v944_v56 = vld [vmem:[#allocation2 + $0x10] sm:$0xff] }
 0x11a   : > { %938 = vst.msk [vmem:[#allocation2 + $0x20] sm:$0xff] %vm933_vm4, %v919_v23  ;;  %v922_v25 = vadd.f32 %v2315_v24, %v2275_v17  ;;  %v2276_v26 = vpop.f32.mrb[12].mxu0 }
 0x11b   : > { %v2277_v27 = vpop.f32.mrb[13].mxu0  ;;  %v945_v61 = vld [vmem:[#allocation2 + $0x18] sm:$0xff] }
 0x11c   : > { %939 = vst.msk [vmem:[#allocation2 + $0x28] sm:$0xff] %vm933_vm4, %v922_v25  ;;  %v2278_v28 = vadd.f32 %v2277_v27, %v2276_v26  ;;  %v2279_v29 = vpop.f32.mrb[14].mxu0 }
 0x11d   : > { %v2280_v30 = vpop.f32.mrb[15].mxu0 }
 0x11e   : > { %v2316_v31 = vpop.f32.mrb[12].mxu1  ;;  %v2281_v32 = vadd.f32 %v2280_v30, %v2279_v29 }
 0x11f   : > { %v2317_v33 = vpop.f32.mrb[13].mxu1 }
 0x120   : > { %v2318_v34 = vadd.f32 %v2317_v33, %v2316_v31  ;;  %v2319_v35 = vpop.f32.mrb[14].mxu1 }
 0x121   : > { %v2320_v14 = vpop.f32.mrb[15].mxu1  ;;  %v946_v1 = vld [vmem:[#allocation2 + $0x20] sm:$0xff] }
 0x122   : > { %v927_v36 = vadd.f32 %v2318_v34, %v2278_v28  ;;  %v2321_v37 = vadd.f32 %v2320_v14, %v2319_v35 }
 0x123   : > { %v947_v16 = vld [vmem:[#allocation2 + $0x28] sm:$0xff] }
 0x124   : > { %940 = vst.msk [vmem:[#allocation2 + $0x30] sm:$0xff] %vm933_vm4, %v927_v36  ;;  %v930_v38 = vadd.f32 %v2321_v37, %v2281_v32  ;;  %v2338_v39 = vpop.f32.mrb[16].mxu0 }
 0x125   : > { %v2339_v40 = vpop.f32.mrb[17].mxu0 }
 0x126   : > { %941 = vst.msk [vmem:[#allocation2 + $0x38] sm:$0xff] %vm933_vm4, %v930_v38  ;;  %v2340_v41 = vadd.f32 %v2339_v40, %v2338_v39  ;;  %v2341_v42 = vpop.f32.mrb[18].mxu0  ;;  %v2421_v43 = vpop.f32.mrb[16].mxu1 }
 0x127   : > { %v2342_v44 = vpop.f32.mrb[19].mxu0  ;;  %v1457_v45 = vpop.f32.mrb[17].mxu1 }
 0x128   : > { %v1303_v4 = vadd.f32 %v2340_v41, %v942_v18  ;;  %v2343_v46 = vadd.f32 %v2342_v44, %v2341_v42  ;;  %v2422_v47 = vpop.f32.mrb[18].mxu1 }
 0x129   : > { %v1460_v49 = vpop.f32.mrb[19].mxu1 }
 0x12a   : > { %1311 = vst.msk [vmem:[#allocation2] sm:$0xff] %vm933_vm4, %v1303_v4  ;;  %v1304_v50 = vadd.f32 %v2343_v46, %v943_v48 }
 0x12b   : > { %v948_v26 = vld [vmem:[#allocation2 + $0x30] sm:$0xff] }
 0x12c   : > { %1312 = vst.msk [vmem:[#allocation2 + $0x8] sm:$0xff] %vm933_vm4, %v1304_v50  ;;  %v2344_v51 = vpop.f32.mrb[20].mxu0 }
 0x12d   : > { %v2345_v52 = vpop.f32.mrb[21].mxu0  ;;  %v949_v30 = vld [vmem:[#allocation2 + $0x38] sm:$0xff] }
 0x12e   : > { %v2346_v53 = vadd.f32 %v2345_v52, %v2344_v51  ;;  %v2347_v54 = vpop.f32.mrb[22].mxu0  ;;  %v3142_v60 = vpop.f32.mrb[20].mxu1 }
 0x12f   : > { %v2348_v58 = vpop.f32.mrb[23].mxu0  ;;  %v1473_v63 = vpop.f32.mrb[21].mxu1 }
 0x130   : > { %v1305_v8 = vadd.f32 %v2346_v53, %v944_v56  ;;  %v2349_v59 = vadd.f32 %v2348_v58, %v2347_v54  ;;  %v3145_v3 = vpop.f32.mrb[22].mxu1 }
 0x131   : > { %v1319_v62 = vld [vmem:[#allocation2] sm:$0xff]  ;;  %v1476_v6 = vpop.f32.mrb[23].mxu1 }
 0x132   : > { %1313 = vst.msk [vmem:[#allocation2 + $0x10] sm:$0xff] %vm933_vm4, %v1305_v8  ;;  %v1306_v0 = vadd.f32 %v2349_v59, %v945_v61  ;;  %v1488_v2 = vadd.f32 %v1457_v45, %v1319_v62 }
 0x133   : > { %v1320_v5 = vld [vmem:[#allocation2 + $0x8] sm:$0xff] }
 0x134   : > { %1314 = vst.msk [vmem:[#allocation2 + $0x18] sm:$0xff] %vm933_vm4, %v1306_v0  ;;  %1496 = vst.msk [vmem:[#allocation2] sm:$0xff] %vm933_vm4, %v1488_v2  ;;  %v1489_v7 = vadd.f32 %v1460_v49, %v1320_v5  ;;  %v2350_v9 = vpop.f32.mrb[24].mxu0 }
 0x135   : > { %v2351_v10 = vpop.f32.mrb[25].mxu0 }
 0x136   : > { %1497 = vst.msk [vmem:[#allocation2 + $0x8] sm:$0xff] %vm933_vm4, %v1489_v7  ;;  %v2352_v11 = vadd.f32 %v2351_v10, %v2350_v9  ;;  %v2353_v12 = vpop.f32.mrb[26].mxu0 }
 0x137   : > { %v2354_v57 = vpop.f32.mrb[27].mxu0 }
 0x138   : > { %v1307_v55 = vadd.f32 %v2352_v11, %v946_v1  ;;  %v2355_v13 = vadd.f32 %v2354_v57, %v2353_v12 }
 0x139   : > { %v1321_v15 = vld [vmem:[#allocation2 + $0x10] sm:$0xff] }
 0x13a   : > { %v1490_v17 = vadd.f32 %v2421_v43, %v1321_v15  ;;  %1315 = vst.msk [vmem:[#allocation2 + $0x20] sm:$0xff] %vm933_vm4, %v1307_v55  ;;  %v1308_v19 = vadd.f32 %v2355_v13, %v947_v16  ;;  %v2233_v15 = vld [vmem:[%s3242_s2] ss:$0 sm:$0xff] }
 0x13b   : > { %v1322_v20 = vld [vmem:[#allocation2 + $0x18] sm:$0xff]  ;;  %v1504_v38 = vld [vmem:[#allocation2] sm:$0xff] }
 0x13c   : > { %1498 = vst.msk [vmem:[#allocation2 + $0x10] sm:$0xff] %vm933_vm4, %v1490_v17  ;;  %v1491_v21 = vadd.f32 %v2422_v47, %v1322_v20  ;;  %1316 = vst.msk [vmem:[#allocation2 + $0x28] sm:$0xff] %vm933_vm4, %v1308_v19  ;;  %v2356_v22 = vpop.f32.mrb[28].mxu0 }
 0x13d   : > { %v2357_v23 = vpop.f32.mrb[29].mxu0  ;;  %v1505_v44 = vld [vmem:[#allocation2 + $0x8] sm:$0xff] }
 0x13e   : > { %1499 = vst.msk [vmem:[#allocation2 + $0x18] sm:$0xff] %vm933_vm4, %v1491_v21  ;;  %v2358_v24 = vadd.f32 %v2357_v23, %v2356_v22  ;;  %v2359_v25 = vpop.f32.mrb[30].mxu0 }
 0x13f   : > { %v2360_v27 = vpop.f32.mrb[31].mxu0 }
 0x140   : > { %v1309_v28 = vadd.f32 %v2358_v24, %v948_v26  ;;  %v2361_v29 = vadd.f32 %v2360_v27, %v2359_v25 }
 0x141   : > { %v1323_v31 = vld [vmem:[#allocation2 + $0x20] sm:$0xff] }
 0x142   : > { %1317 = vst.msk [vmem:[#allocation2 + $0x30] sm:$0xff] %vm933_vm4, %v1309_v28  ;;  %v1310_v32 = vadd.f32 %v2361_v29, %v949_v30  ;;  %v1492_v33 = vadd.f32 %v1473_v63, %v1323_v31 }
 0x143   : > { %v1324_v34 = vld [vmem:[#allocation2 + $0x28] sm:$0xff]  ;;  %v1506_v35 = vld [vmem:[#allocation2 + $0x10] sm:$0xff] }
 0x144   : > { %1318 = vst.msk [vmem:[#allocation2 + $0x38] sm:$0xff] %vm933_vm4, %v1310_v32  ;;  %1500 = vst.msk [vmem:[#allocation2 + $0x20] sm:$0xff] %vm933_vm4, %v1492_v33  ;;  %v1493_v14 = vadd.f32 %v1476_v6, %v1324_v34  ;;  %v2445_v36 = vpop.f32.mrb[32].mxu0 }
 0x145   : > { %v1675_v37 = vadd.f32 %v2445_v36, %v1506_v35  ;;  %v1642_v39 = vpop.f32.mrb[33].mxu0  ;;  %v1507_v40 = vld [vmem:[#allocation2 + $0x18] sm:$0xff] }
 0x146   : > { %1501 = vst.msk [vmem:[#allocation2 + $0x28] sm:$0xff] %vm933_vm4, %v1493_v14  ;;  %v1673_v41 = vadd.f32 %v1642_v39, %v1504_v38  ;;  %v2446_v42 = vpop.f32.mrb[34].mxu0  ;;  %v2469_v43 = vpop.f32.mrb[24].mxu1 }
 0x147   : > { %1683 = vst.msk [vmem:[#allocation2 + $0x10] sm:$0xff] %vm933_vm4, %v1675_v37  ;;  %v1676_v18 = vadd.f32 %v2446_v42, %v1507_v40  ;;  %v1645_v45 = vpop.f32.mrb[35].mxu0  ;;  %v1827_v4 = vpop.f32.mrb[25].mxu1 }
 0x148   : > { %1681 = vst.msk [vmem:[#allocation2] sm:$0xff] %vm933_vm4, %v1673_v41  ;;  %v1674_v46 = vadd.f32 %v1645_v45, %v1505_v44  ;;  %v2470_v47 = vpop.f32.mrb[26].mxu1 }
 0x149   : > { %v1325_v48 = vld [vmem:[#allocation2 + $0x30] sm:$0xff]  ;;  %1684 = vst.msk [vmem:[#allocation2 + $0x18] sm:$0xff] %vm933_vm4, %v1676_v18  ;;  %v1830_v49 = vpop.f32.mrb[27].mxu1 }
 0x14a   : > { %v1494_v50 = vadd.f32 %v3142_v60, %v1325_v48  ;;  %1682 = vst.msk [vmem:[#allocation2 + $0x8] sm:$0xff] %vm933_vm4, %v1674_v46 }
 0x14b   : > { %v1326_v51 = vld [vmem:[#allocation2 + $0x38] sm:$0xff]  ;;  %v1508_v54 = vld [vmem:[#allocation2 + $0x20] sm:$0xff] }
 0x14c   : > { %1502 = vst.msk [vmem:[#allocation2 + $0x30] sm:$0xff] %vm933_vm4, %v1494_v50  ;;  %v1495_v52 = vadd.f32 %v3145_v3, %v1326_v51  ;;  %v2449_v53 = vpop.f32.mrb[36].mxu0 }
 0x14d   : > { %v1658_v56 = vpop.f32.mrb[37].mxu0  ;;  %v1509_v63 = vld [vmem:[#allocation2 + $0x28] sm:$0xff] }
 0x14e   : > { %1503 = vst.msk [vmem:[#allocation2 + $0x38] sm:$0xff] %vm933_vm4, %v1495_v52  ;;  %v1677_v58 = vadd.f32 %v1658_v56, %v1508_v54  ;;  %v2450_v8 = vpop.f32.mrb[38].mxu0  ;;  %v1691_v59 = vld [vmem:[#allocation2 + $0x10] sm:$0xff]  ;;  %v2473_v61 = vpop.f32.mrb[28].mxu1 }
 0x14f   : > { %v1860_v62 = vadd.f32 %v2469_v43, %v1691_v59  ;;  %v1661_v0 = vpop.f32.mrb[39].mxu0  ;;  %v1689_v60 = vld [vmem:[#allocation2] sm:$0xff]  ;;  %v1843_v2 = vpop.f32.mrb[29].mxu1 }
 0x150   : > { %1685 = vst.msk [vmem:[#allocation2 + $0x20] sm:$0xff] %vm933_vm4, %v1677_v58  ;;  %v1678_v5 = vadd.f32 %v1661_v0, %v1509_v63  ;;  %v1858_v6 = vadd.f32 %v1827_v4, %v1689_v60  ;;  %v1692_v7 = vld [vmem:[#allocation2 + $0x18] sm:$0xff]  ;;  %v2474_v3 = vpop.f32.mrb[30].mxu1 }
 0x151   : > { %1868 = vst.msk [vmem:[#allocation2 + $0x10] sm:$0xff] %vm933_vm4, %v1860_v62  ;;  %v1861_v9 = vadd.f32 %v2470_v47, %v1692_v7  ;;  %v1690_v10 = vld [vmem:[#allocation2 + $0x8] sm:$0xff]  ;;  %v1846_v11 = vpop.f32.mrb[31].mxu1 }
 0x152   : > { %1686 = vst.msk [vmem:[#allocation2 + $0x28] sm:$0xff] %vm933_vm4, %v1678_v5  ;;  %1866 = vst.msk [vmem:[#allocation2] sm:$0xff] %vm933_vm4, %v1858_v6  ;;  %v1859_v12 = vadd.f32 %v1830_v49, %v1690_v10 }
 0x153   : > { %v1510_v1 = vld [vmem:[#allocation2 + $0x30] sm:$0xff]  ;;  %1869 = vst.msk [vmem:[#allocation2 + $0x18] sm:$0xff] %vm933_vm4, %v1861_v9 }
 0x154   : > { %v1679_v57 = vadd.f32 %v2449_v53, %v1510_v1  ;;  %1867 = vst.msk [vmem:[#allocation2 + $0x8] sm:$0xff] %vm933_vm4, %v1859_v12 }
 0x155   : > { %v1511_v55 = vld [vmem:[#allocation2 + $0x38] sm:$0xff] }
 0x156   : > { %1687 = vst.msk [vmem:[#allocation2 + $0x30] sm:$0xff] %vm933_vm4, %v1679_v57  ;;  %v1680_v13 = vadd.f32 %v2450_v8, %v1511_v55 }
 0x157   : > { %v1693_v16 = vld [vmem:[#allocation2 + $0x20] sm:$0xff] }
 0x158   : > { %1688 = vst.msk [vmem:[#allocation2 + $0x38] sm:$0xff] %vm933_vm4, %v1680_v13  ;;  %v1876_v17 = vld [vmem:[#allocation2 + $0x10] sm:$0xff]  ;;  %v1862_v19 = vadd.f32 %v1843_v2, %v1693_v16 }
 0x159   : > { %v1874_v20 = vld [vmem:[#allocation2] sm:$0xff]  ;;  %v1694_v21 = vld [vmem:[#allocation2 + $0x28] sm:$0xff]  ;;  %v1891_v25 = vadd.f32 %v2233_v15, %v1876_v17 }
 0x15a   : > { %v1889_v22 = vadd.f32 %v2233_v15, %v1874_v20  ;;  %1870 = vst.msk [vmem:[#allocation2 + $0x20] sm:$0xff] %vm933_vm4, %v1862_v19  ;;  %v1863_v23 = vadd.f32 %v1846_v11, %v1694_v21  ;;  %v1877_v24 = vld [vmem:[#allocation2 + $0x18] sm:$0xff] }
 0x15b   : > { %v1875_v26 = vld [vmem:[#allocation2 + $0x8] sm:$0xff]  ;;  %v1892_v28 = vadd.f32 %v2233_v15, %v1877_v24  ;;  %v1899_v33 = vmax.f32 %v1891_v25, 0.0 }
 0x15c   : > { %v1890_v27 = vadd.f32 %v2233_v15, %v1875_v26  ;;  %1871 = vst.msk [vmem:[#allocation2 + $0x28] sm:$0xff] %vm933_vm4, %v1863_v23  ;;  %v1897_v29 = vmax.f32 %v1889_v22, 0.0 }
 0x15d   : > { %v1695_v30 = vld [vmem:[#allocation2 + $0x30] sm:$0xff]  ;;  %v1900_v14 = vmax.f32 %v1892_v28, 0.0  ;;  %v1908_v41 = vsel %vm933_vm4, %v1899_v33, 0.0 }
 0x15e   : > { %v1864_v31 = vadd.f32 %v2473_v61, %v1695_v30  ;;  %v1898_v32 = vmax.f32 %v1890_v27, 0.0  ;;  %v1905_v36 = vsel %vm933_vm4, %v1897_v29, 0.0 }
 0x15f   : > { %v1696_v34 = vld [vmem:[#allocation2 + $0x38] sm:$0xff]  ;;  %v1910_v45 = vsel %vm933_vm4, %v1900_v14, 0.0 }
 0x160   : > { %1872 = vst.msk [vmem:[#allocation2 + $0x30] sm:$0xff] %vm933_vm4, %v1864_v31  ;;  %v1865_v35 = vadd.f32 %v2474_v3, %v1696_v34  ;;  %v1906_v37 = vsel %vm933_vm4, %v1898_v32, 0.0  ;;  %v1935_v3 = vld [vmem:[%s3244_s4] sm:$0x1] }
 0x161   : > { %v1878_v38 = vld [vmem:[#allocation2 + $0x20] sm:$0xff]  ;;  %v1907_v39 = vadd.f32 %v1906_v37, %v1905_v36 }
 0x162   : > { %1873 = vst.msk [vmem:[#allocation2 + $0x38] sm:$0xff] %vm933_vm4, %v1865_v35  ;;  %v1893_v40 = vadd.f32 %v2233_v15, %v1878_v38 }
 0x163   : > { %v1879_v42 = vld [vmem:[#allocation2 + $0x28] sm:$0xff]  ;;  %v1909_v43 = vadd.f32 %v1908_v41, %v1907_v39 }
 0x164   : > { %v1894_v18 = vadd.f32 %v2233_v15, %v1879_v42  ;;  %v1901_v44 = vmax.f32 %v1893_v40, 0.0 }
 0x165   : > { %v1911_v4 = vadd.f32 %v1910_v45, %v1909_v43 }
 0x166   : > { %v1902_v46 = vmax.f32 %v1894_v18, 0.0  ;;  %v1912_v47 = vsel %vm933_vm4, %v1901_v44, 0.0 }
 0x167   : > { %v1880_v48 = vld [vmem:[#allocation2 + $0x30] sm:$0xff]  ;;  %v1913_v49 = vadd.f32 %v1912_v47, %v1911_v4 }
 0x168   : > { %v1895_v50 = vadd.f32 %v2233_v15, %v1880_v48  ;;  %v1914_v51 = vsel %vm933_vm4, %v1902_v46, 0.0 }
 0x169   : > { %v1881_v52 = vld [vmem:[#allocation2 + $0x38] sm:$0xff]  ;;  %v1915_v56 = vadd.f32 %v1914_v51, %v1913_v49 }
 0x16a   : > { %v1896_v53 = vadd.f32 %v2233_v15, %v1881_v52  ;;  %v1903_v54 = vmax.f32 %v1895_v50, 0.0 }
 0x16c   : > { %v1904_v58 = vmax.f32 %v1896_v53, 0.0  ;;  %v1916_v8 = vsel %vm933_vm4, %v1903_v54, 0.0 }
 0x16d   : > { %v1917_v59 = vadd.f32 %v1916_v8, %v1915_v56 }
 0x16e   : > { %v1918_v61 = vsel %vm933_vm4, %v1904_v58, 0.0 }
 0x16f   : > { %v1919_v62 = vadd.f32 %v1918_v61, %v1917_v59 }
 0x171   : > { %v1920_v63 = vrot.slane %v1919_v62, 4 }
 0x173   : > { %v1921_v0 = vadd.f32 %v1920_v63, %v1919_v62 }
 0x175   : > { %v1922_v60 = vrot.slane %v1921_v0, 2 }
 0x177   : > { %v1923_v2 = vadd.f32 %v1922_v60, %v1921_v0 }
 0x179   : > { %v1924_v5 = vrot.slane %v1923_v2, 1 }
 0x17b   : > { %v1925_v6 = vadd.f32 %v1924_v5, %v1923_v2 }
 0x17d   : > { %v1926_v7 = vpack.c.bf16 %v1925_v6, %v1925_v6 }
 0x17f   : > { %2484 = vmatmul.mubr.msk.bf16.vlgmr.msra.gmra.mrb[40].mxu0 %vm933_vm4, %v1926_v7 }
 0x252   : > { %v1997_v9 = vpop.f32.mrb[40].mxu0 }
 0x253   : > { %v1998_v10 = vadd.f32 %v1997_v9, %v1935_v3  ;;  %v2485_v11 = vpop.f32.mrb[41].mxu0 }
 0x254   : > { %v2000_v12 = vpop.f32.mrb[42].mxu0 }
 0x255   : > { %2003 = vst [vmem:[%s216_s13] sm:$0x1] %v1998_v10  ;;  %v2486_v1 = vpop.f32.mrb[43].mxu0 }
 0x256   : > { %2618 = shalt.err (!%p2615_p3)
}
 0x257   : > { %s2619_s6 = scalar_lea.hbm %s3198_s23, 16  ;;  %s2623_s9 = scalar_lea.hbm %s3245_s5, 32 }
 0x258   : > { %p2620_p4 = scmp.ne.s32.totalorder %s3198_s23, %s2619_s6  ;;  %p2624_p9 = scmp.lt.u32.totalorder %s3198_s23, %s3245_s5 }
 0x259   : > { %p2625_p10 = scmp.lt.u32.totalorder %s2623_s9, %s2619_s6  ;;  %p2627_p12 = scmp.lt.u32.totalorder %s2619_s6, %s3198_s23 }
 0x25a   : > { %p2621_p7 = pnand %p2620_p4, %p2740_p5 }
 0x25b   : > { %p2626_p11 = por %p2625_p10, %p2624_p9 }
 0x25c   : > { %p2622_p8 = pneg %p2621_p7 }
 0x25d   : > { %p2628_p13 = por %p2627_p12, %p2626_p11 }
 0x25f   : > { %p2629_p0 = pnand %p2628_p13, %p2622_p8 }
 0x261   : > { %2632 = shalt.err (!%p2629_p0)
}
 0x262   : > { %2488 = dma.vmem_to_hbm [thread:$0]  (%p2740_p5), %s3200_s14, 16, %s3198_s23, %s2005_s25  }
 0x263 PF: > { %p2494_p1 = scmp.ge.s32.totalorder %s2667_s21, 2  ;;  %s2029_s12 = sand.u32 1, %s2655_s18  }
 0x264   : > { %s2030_s13 = scalar_lea.sflag [#allocation4], %s2029_s12 }
 0x265   : > { %p2491_p2 = pnand %p2494_p1, %p2744_p6 }
 0x267   : > { %2650 = dma.done.wait (!%p2491_p2), %s2030_s13, 16  }
 0x268   : > { %2652 = vsyncadd (!%p2491_p2), %s2030_s13, 4294967280  ;;  %p15_p3 = scmp.ge.s32.totalorder %s2727_s24, 4   ;;  %s3250_s18 = smov %s2659_s19 }
 0x269   : > { %s3251_s19 = smov %s2663_s20  ;;  %s3252_s20 = smov %s2738_s27 }
 0x26a   : > { %s3253_s21 = smov %s2727_s24  ;;  %17 = sbr.rel (!%p15_p3) target bundleno = 3 (0x3), region = 76 }
 0x271   :  { %2034 = vsyncpa [#allocation4], 1 }
 0x272   :  { %2036 = vsyncpa [#allocation4 + $0x1], 1 }

</bundles_post_ra>
